<compile_context>
chip_gen: v6e
topology: v6e:2x2x1
jax: 0.10.0
libtpu: 0.0.40
codegen_flags: <defaults>
</compile_context>

<pallas_src>
import math
import numpy as np
import jax
import jax.numpy as jnp
from jax import lax
from jax.experimental import pallas as pl
from jax.experimental.pallas import tpu as pltpu


def make_mha_kernel(num_heads, head_dim, lk, block_b):
    D = num_heads * head_dim
    bf16 = jnp.bfloat16

    def kernel(q_ref, k_ref, v_ref, wq_ref, wk_ref, wv_ref,
               bq_ref, bk_ref, bv_ref, p_bcast_ref, o_ref):
        dotf = lambda a, b: jnp.dot(a, b, preferred_element_type=jnp.float32)

        # --- fused projections: bf16 operands on the MXU, f32 accumulation ---
        # 1/sqrt(head_dim) is already folded into wq/bq by the wrapper.
        q = dotf(q_ref[...], wq_ref[...]) + bq_ref[...]              # [TB, D]     f32
        k = dotf(k_ref[...], wk_ref[...]) + bk_ref[...]              # [TB*Lk, D]  f32
        v = dotf(v_ref[...], wv_ref[...]) + bv_ref[...]              # [TB*Lk, D]  f32
        k3 = k.reshape(block_b, lk, D)                               # [TB, Lk, D]
        v3 = v.reshape(block_b, lk, D)

        # --- per-head scores via a head-pooling dot against the dense [H, D]
        # 0/1 map, contracting over D (trans_b).  bf16 operands, f32 acc. ---
        qk = (q[:, None, :] * k3).reshape(block_b * lk, D)           # f32, VPU
        scores = lax.dot_general(qk.astype(bf16), p_bcast_ref[...],
                                 (((1,), (1,)), ((), ())),
                                 preferred_element_type=jnp.float32)  # [TB*Lk, H]
        scores = scores.reshape(block_b, lk, num_heads)              # [TB, Lk, H]

        # --- softmax over the key axis.  f32 elementwise (v5e-safe); the
        # reciprocal goes to the EUP slot.  Layout is lane-sparse (H in lanes)
        # but negligible at Lk=8; switch to [TB*H, Lk] if Lk ever grows. ---
        m = jnp.max(scores, axis=1, keepdims=True)
        e = jnp.exp(scores - m)
        denom = jnp.sum(e, axis=1, keepdims=True)
        attn = e * pl.reciprocal(denom, approx=True)                 # [TB, Lk, H]

        # --- broadcast head weights back to the feature dim, weighted V sum ---
        attn_b = dotf(attn.reshape(block_b * lk, num_heads).astype(bf16),
                      p_bcast_ref[...]).reshape(block_b, lk, D)      # [TB, Lk, D]
        o_ref[...] = jnp.sum(attn_b * v3, axis=1)                    # [TB, D] head-major

    return kernel


def _default_num_batch_tiles(B, Lk):
    """v7x has 2 TensorCores/chip -> one batch tile per core.  v5e/v6e have a
    single TC, so extra grid steps are pure per-step overhead -> one step."""
    try:
        kind = jax.devices()[0].device_kind.lower()
    except Exception:
        kind = ""
    if "v7" in kind and B % 2 == 0 and (B // 2) % 8 == 0 and ((B // 2) * Lk) % 8 == 0:
        return 2
    return 1


def _vmem_limit_bytes(block_b, Lk, D, H):
    """Scoped-VMEM budget derived from the actual block sizes (+headroom)."""
    bf, f4 = 2, 4
    blocks = (block_b * D * bf                       # q
              + 2 * block_b * Lk * D * bf            # k, v
              + 3 * D * D * bf                       # Wq, Wk, Wv
              + 3 * 8 * D * f4                       # biases (sublane-padded)
              + max(8, H) * D * bf                   # p_bcast (sublane-padded)
              + block_b * D * f4)                    # output
    temps = 8 * block_b * Lk * D * f4                # f32 intermediates headroom
    need = 2 * blocks + temps                        # BlockSpec double-buffering
    # floor for comfort, cap at v7x's 64 MiB physical per-TC VMEM
    return int(min(64 * 2 ** 20, max(16 * 2 ** 20, 2 * need)))


def mha_forward(query, key, value, params, num_heads, *, num_batch_tiles=None):
    """Pallas forward. query: [B, 1, D]; key/value: [B, Lk, D].

    Returns (context [B, H, hd], attn_output [B, H*hd]) matching the PyTorch
    module's outputs for the Lq == 1 case it is used with.
    """
    B, Lq, D = query.shape
    assert Lq == 1, "kernel models the Lq == 1 case used by the parent model"
    Lk = key.shape[1]
    H = num_heads
    assert D % H == 0
    hd = D // H

    if num_batch_tiles is None:
        num_batch_tiles = _default_num_batch_tiles(B, Lk)
    assert B % num_batch_tiles == 0, "pad B or pick a batch-tile count dividing B"
    block_b = B // num_batch_tiles
    # (8,128) rule: blocks must be sublane-aligned or span the full array.
    if num_batch_tiles > 1 and (block_b % 8 != 0 or (block_b * Lk) % 8 != 0):
        num_batch_tiles, block_b = 1, B
    grid = (num_batch_tiles,)

    bf16, f32 = jnp.bfloat16, jnp.float32
    inv_sqrt_hd = 1.0 / math.sqrt(hd)

    q2 = query.reshape(B, D).astype(bf16)
    k2 = key.reshape(B * Lk, D).astype(bf16)
    v2 = value.reshape(B * Lk, D).astype(bf16)
    # Fold the 1/sqrt(head_dim) score scale into the Q projection (exact for
    # power-of-two head_dim; zero kernel cost).
    wq = (params["wq"].astype(f32) * inv_sqrt_hd).astype(bf16)
    bq = (params["bq"].astype(f32) * inv_sqrt_hd).reshape(1, D)
    wk = params["wk"].astype(bf16)
    wv = params["wv"].astype(bf16)
    bk = params["bk"].astype(f32).reshape(1, D)
    bv = params["bv"].astype(f32).reshape(1, D)
    # Dense [H, D] 0/1 head map (exact in bf16).  Used transposed for head
    # pooling and directly for the head broadcast, so the lane-sparse [D, H]
    # operand of the previous revision is gone.
    p_bcast = jnp.repeat(jnp.eye(H, dtype=bf16), hd, axis=1)          # [H, D]

    tbk = block_b * Lk
    in_specs = [
        pl.BlockSpec((block_b, D), lambda i: (i, 0)),   # q
        pl.BlockSpec((tbk, D), lambda i: (i, 0)),       # k (flattened [B*Lk, D])
        pl.BlockSpec((tbk, D), lambda i: (i, 0)),       # v
        pl.BlockSpec((D, D), lambda i: (0, 0)),         # Wq (pre-scaled)
        pl.BlockSpec((D, D), lambda i: (0, 0)),         # Wk
        pl.BlockSpec((D, D), lambda i: (0, 0)),         # Wv
        pl.BlockSpec((1, D), lambda i: (0, 0)),         # bq (pre-scaled)
        pl.BlockSpec((1, D), lambda i: (0, 0)),         # bk
        pl.BlockSpec((1, D), lambda i: (0, 0)),         # bv
        pl.BlockSpec((H, D), lambda i: (0, 0)),         # p_bcast
    ]

    ctx_flat = pl.pallas_call(
        make_mha_kernel(H, hd, Lk, block_b),
        out_shape=jax.ShapeDtypeStruct((B, D), f32),
        grid=grid,
        in_specs=in_specs,
        out_specs=pl.BlockSpec((block_b, D), lambda i: (i, 0)),
        compiler_params=pltpu.CompilerParams(
            dimension_semantics=("parallel",),
            vmem_limit_bytes=_vmem_limit_bytes(block_b, Lk, D, H)),
    )(q2, k2, v2, wq, wk, wv, bq, bk, bv, p_bcast)

    # ctx_flat[b, h*hd + d] == context[b, h, d]  (head-major)
    context = ctx_flat.reshape(B, H, hd)
    # torch: context.transpose(1, 2).contiguous().view(B, -1, H*hd).squeeze()
    # -> d-major flatten; pure layout plumbing, done outside the kernel for free.
    attn_output = jnp.transpose(context, (0, 2, 1)).reshape(B, H * hd)
    return context, attn_output


def reference_forward(query, key, value, params, num_heads):
    """Pure-JAX mirror of the PyTorch forward (Lq == 1), for validation."""
    B, Lq, D = query.shape
    Lk = key.shape[1]
    H = num_heads
    hd = D // H
    Q = query @ params["wq"] + params["bq"]
    K = key @ params["wk"] + params["bk"]
    V = value @ params["wv"] + params["bv"]
    Qh = Q.reshape(B, Lq, H, hd).transpose(0, 2, 1, 3)               # [B,H,1,hd]
    Kh = K.reshape(B, Lk, H, hd).transpose(0, 2, 1, 3)               # [B,H,Lk,hd]
    Vh = V.reshape(B, Lk, H, hd).transpose(0, 2, 1, 3)
    scores = jnp.einsum("bhqd,bhkd->bhqk", Qh, Kh) / math.sqrt(hd)
    attn = jax.nn.softmax(scores, axis=-1)
    ctx = jnp.einsum("bhqk,bhkd->bhqd", attn, Vh)
    context = ctx[:, :, 0, :]                                        # squeeze(dim=2)
    attn_output = context.transpose(0, 2, 1).reshape(B, H * hd)      # d-major flatten
    return context, attn_output


def init_params(key, D):
    ks = jax.random.split(key, 6)
    lim = 1.0 / math.sqrt(D)
    u = lambda k, shape: jax.random.uniform(k, shape, jnp.float32, -lim, lim)
    return dict(
        wq=u(ks[0], (D, D)), bq=u(ks[1], (D,)),
        wk=u(ks[2], (D, D)), bk=u(ks[3], (D,)),
        wv=u(ks[4], (D, D)), bv=u(ks[5], (D,)),
    )


if __name__ == "__main__":
    key0 = jax.random.PRNGKey(0)
    kq, kk, kv, kp = jax.random.split(key0, 4)

    B, LK, D, H = 32, 8, 128, 8            # batch, key slots, embed_dim, num_heads
    query = jax.random.normal(kq, (B, 1, D), jnp.float32)
    key_t = jax.random.normal(kk, (B, LK, D), jnp.float32)
    value = jax.random.normal(kv, (B, LK, D), jnp.float32)
    params = init_params(kp, D)

    context, attn_output = mha_forward(query, key_t, value, params, H)
    context = jax.block_until_ready(context)
    attn_output = jax.block_until_ready(attn_output)

    ref_ctx, ref_attn = reference_forward(query, key_t, value, params, H)
    np.testing.assert_allclose(np.asarray(context), np.asarray(ref_ctx),
                               rtol=2e-2, atol=2e-2)
    np.testing.assert_allclose(np.asarray(attn_output), np.asarray(ref_attn),
                               rtol=2e-2, atol=2e-2)
    print("KERNEL_OK")
</pallas_src>

<mosaic_0001>
module attributes {stable_mosaic.version = 11 : i64} {
  func.func @kernel(%arg0: i32, %arg1: memref<32x128xbf16, #tpu.memory_space<vmem>>, %arg2: memref<256x128xbf16, #tpu.memory_space<vmem>>, %arg3: memref<256x128xbf16, #tpu.memory_space<vmem>>, %arg4: memref<128x128xbf16, #tpu.memory_space<vmem>>, %arg5: memref<128x128xbf16, #tpu.memory_space<vmem>>, %arg6: memref<128x128xbf16, #tpu.memory_space<vmem>>, %arg7: memref<1x128xf32, #tpu.memory_space<vmem>>, %arg8: memref<1x128xf32, #tpu.memory_space<vmem>>, %arg9: memref<1x128xf32, #tpu.memory_space<vmem>>, %arg10: memref<8x128xbf16, #tpu.memory_space<vmem>>, %arg11: memref<32x128xf32, #tpu.memory_space<vmem>>) attributes {dimension_semantics = [#tpu.dimension_semantics<parallel>], iteration_bounds = array<i64: 1>, scalar_prefetch = 0 : i64, scratch_operands = 0 : i64, tpu.core_type = #tpu.core_type<tc>, window_params = [{transform_indices = @transform_0, window_bounds = array<i64: 32, 128>}, {transform_indices = @transform_1, window_bounds = array<i64: 256, 128>}, {transform_indices = @transform_2, window_bounds = array<i64: 256, 128>}, {pipeline_mode = #tpu.pipeline_mode<synchronous>, transform_indices = @transform_3, window_bounds = array<i64: 128, 128>}, {pipeline_mode = #tpu.pipeline_mode<synchronous>, transform_indices = @transform_4, window_bounds = array<i64: 128, 128>}, {pipeline_mode = #tpu.pipeline_mode<synchronous>, transform_indices = @transform_5, window_bounds = array<i64: 128, 128>}, {pipeline_mode = #tpu.pipeline_mode<synchronous>, transform_indices = @transform_6, window_bounds = array<i64: 1, 128>}, {pipeline_mode = #tpu.pipeline_mode<synchronous>, transform_indices = @transform_7, window_bounds = array<i64: 1, 128>}, {pipeline_mode = #tpu.pipeline_mode<synchronous>, transform_indices = @transform_8, window_bounds = array<i64: 1, 128>}, {pipeline_mode = #tpu.pipeline_mode<synchronous>, transform_indices = @transform_9, window_bounds = array<i64: 8, 128>}, {transform_indices = @transform_10, window_bounds = array<i64: 32, 128>}]} {
    %c0 = arith.constant 0 : index
    %c0_0 = arith.constant 0 : index
    %0 = vector.load %arg1[%c0, %c0_0] : memref<32x128xbf16, #tpu.memory_space<vmem>>, vector<32x128xbf16>
    %c0_1 = arith.constant 0 : index
    %c0_2 = arith.constant 0 : index
    %1 = vector.load %arg4[%c0_1, %c0_2] : memref<128x128xbf16, #tpu.memory_space<vmem>>, vector<128x128xbf16>
    %cst = arith.constant dense<0.000000e+00> : vector<32x128xf32>
    %2 = tpu.matmul %0, %1, %cst {dimension_numbers = #tpu.dot_dimension_numbers<[1], [0], [0], [1], [0, 0, 1, 1], [], []>} : vector<32x128xbf16>, vector<128x128xbf16>, vector<32x128xf32> -> vector<32x128xf32>
    %c0_3 = arith.constant 0 : index
    %c0_4 = arith.constant 0 : index
    %3 = vector.load %arg7[%c0_3, %c0_4] : memref<1x128xf32, #tpu.memory_space<vmem>>, vector<1x128xf32>
    %4 = vector.broadcast %3 : vector<1x128xf32> to vector<32x128xf32>
    %5 = arith.addf %2, %4 : vector<32x128xf32>
    %c0_5 = arith.constant 0 : index
    %c0_6 = arith.constant 0 : index
    %6 = vector.load %arg2[%c0_5, %c0_6] : memref<256x128xbf16, #tpu.memory_space<vmem>>, vector<256x128xbf16>
    %c0_7 = arith.constant 0 : index
    %c0_8 = arith.constant 0 : index
    %7 = vector.load %arg5[%c0_7, %c0_8] : memref<128x128xbf16, #tpu.memory_space<vmem>>, vector<128x128xbf16>
    %cst_9 = arith.constant dense<0.000000e+00> : vector<256x128xf32>
    %8 = tpu.matmul %6, %7, %cst_9 {dimension_numbers = #tpu.dot_dimension_numbers<[1], [0], [0], [1], [0, 0, 1, 1], [], []>} : vector<256x128xbf16>, vector<128x128xbf16>, vector<256x128xf32> -> vector<256x128xf32>
    %c0_10 = arith.constant 0 : index
    %c0_11 = arith.constant 0 : index
    %9 = vector.load %arg8[%c0_10, %c0_11] : memref<1x128xf32, #tpu.memory_space<vmem>>, vector<1x128xf32>
    %10 = vector.broadcast %9 : vector<1x128xf32> to vector<256x128xf32>
    %11 = arith.addf %8, %10 : vector<256x128xf32>
    %c0_12 = arith.constant 0 : index
    %c0_13 = arith.constant 0 : index
    %12 = vector.load %arg3[%c0_12, %c0_13] : memref<256x128xbf16, #tpu.memory_space<vmem>>, vector<256x128xbf16>
    %c0_14 = arith.constant 0 : index
    %c0_15 = arith.constant 0 : index
    %13 = vector.load %arg6[%c0_14, %c0_15] : memref<128x128xbf16, #tpu.memory_space<vmem>>, vector<128x128xbf16>
    %cst_16 = arith.constant dense<0.000000e+00> : vector<256x128xf32>
    %14 = tpu.matmul %12, %13, %cst_16 {dimension_numbers = #tpu.dot_dimension_numbers<[1], [0], [0], [1], [0, 0, 1, 1], [], []>} : vector<256x128xbf16>, vector<128x128xbf16>, vector<256x128xf32> -> vector<256x128xf32>
    %c0_17 = arith.constant 0 : index
    %c0_18 = arith.constant 0 : index
    %15 = vector.load %arg9[%c0_17, %c0_18] : memref<1x128xf32, #tpu.memory_space<vmem>>, vector<1x128xf32>
    %16 = vector.broadcast %15 : vector<1x128xf32> to vector<256x128xf32>
    %17 = arith.addf %14, %16 : vector<256x128xf32>
    %18 = vector.shape_cast %11 : vector<256x128xf32> to vector<32x8x128xf32>
    %19 = vector.shape_cast %17 : vector<256x128xf32> to vector<32x8x128xf32>
    %20 = vector.shape_cast %5 : vector<32x128xf32> to vector<32x1x128xf32>
    %21 = vector.broadcast %20 : vector<32x1x128xf32> to vector<32x8x128xf32>
    %22 = arith.mulf %21, %18 : vector<32x8x128xf32>
    %23 = vector.shape_cast %22 : vector<32x8x128xf32> to vector<256x128xf32>
    %24 = arith.truncf %23 : vector<256x128xf32> to vector<256x128xbf16>
    %c0_19 = arith.constant 0 : index
    %c0_20 = arith.constant 0 : index
    %25 = vector.load %arg10[%c0_19, %c0_20] : memref<8x128xbf16, #tpu.memory_space<vmem>>, vector<8x128xbf16>
    %cst_21 = arith.constant dense<0.000000e+00> : vector<256x8xf32>
    %26 = tpu.matmul %24, %25, %cst_21 {dimension_numbers = #tpu.dot_dimension_numbers<[1], [1], [0], [0], [0, 0, 1, 0], [], []>} : vector<256x128xbf16>, vector<8x128xbf16>, vector<256x8xf32> -> vector<256x8xf32>
    %27 = vector.shape_cast %26 : vector<256x8xf32> to vector<32x8x8xf32>
    %cst_22 = arith.constant dense<0xFF800000> : vector<32x8xf32>
    %28 = vector.multi_reduction <maximumf>, %27, %cst_22 [1] : vector<32x8x8xf32> to vector<32x8xf32>
    %29 = vector.shape_cast %28 : vector<32x8xf32> to vector<32x1x8xf32>
    %30 = vector.broadcast %29 : vector<32x1x8xf32> to vector<32x8x8xf32>
    %31 = arith.subf %27, %30 : vector<32x8x8xf32>
    %32 = math.exp %31 : vector<32x8x8xf32>
    %cst_23 = arith.constant dense<0.000000e+00> : vector<32x8xf32>
    %33 = vector.multi_reduction <add>, %32, %cst_23 [1] : vector<32x8x8xf32> to vector<32x8xf32>
    %34 = vector.shape_cast %33 : vector<32x8xf32> to vector<32x1x8xf32>
    %35 = tpu.reciprocal %34 {approx = true} : vector<32x1x8xf32> -> vector<32x1x8xf32>
    %36 = vector.broadcast %35 : vector<32x1x8xf32> to vector<32x8x8xf32>
    %37 = arith.mulf %32, %36 : vector<32x8x8xf32>
    %38 = vector.shape_cast %37 : vector<32x8x8xf32> to vector<256x8xf32>
    %39 = arith.truncf %38 : vector<256x8xf32> to vector<256x8xbf16>
    %c0_24 = arith.constant 0 : index
    %c0_25 = arith.constant 0 : index
    %40 = vector.load %arg10[%c0_24, %c0_25] : memref<8x128xbf16, #tpu.memory_space<vmem>>, vector<8x128xbf16>
    %cst_26 = arith.constant dense<0.000000e+00> : vector<256x128xf32>
    %41 = tpu.matmul %39, %40, %cst_26 {dimension_numbers = #tpu.dot_dimension_numbers<[1], [0], [0], [1], [0, 0, 1, 1], [], []>} : vector<256x8xbf16>, vector<8x128xbf16>, vector<256x128xf32> -> vector<256x128xf32>
    %42 = vector.shape_cast %41 : vector<256x128xf32> to vector<32x8x128xf32>
    %43 = arith.mulf %42, %19 : vector<32x8x128xf32>
    %cst_27 = arith.constant dense<0.000000e+00> : vector<32x128xf32>
    %44 = vector.multi_reduction <add>, %43, %cst_27 [1] : vector<32x8x128xf32> to vector<32x128xf32>
    %c0_28 = arith.constant 0 : index
    %c0_29 = arith.constant 0 : index
    %45 = vector.load %arg11[%c0_28, %c0_29] : memref<32x128xf32, #tpu.memory_space<vmem>>, vector<32x128xf32>
    tpu.vector_store %arg11[%c0_28, %c0_29], %44 {strides = array<i32>} : memref<32x128xf32, #tpu.memory_space<vmem>>, vector<32x128xf32>,
    return
  }
  func.func @transform_0(%arg0: i32) -> (i32, i32) {
    %c0_i32 = arith.constant 0 : i32
    %c0_i32_0 = arith.constant 0 : i32
    return %arg0, %c0_i32 : i32, i32
  }
  func.func @transform_1(%arg0: i32) -> (i32, i32) {
    %c0_i32 = arith.constant 0 : i32
    %c0_i32_0 = arith.constant 0 : i32
    return %arg0, %c0_i32 : i32, i32
  }
  func.func @transform_2(%arg0: i32) -> (i32, i32) {
    %c0_i32 = arith.constant 0 : i32
    %c0_i32_0 = arith.constant 0 : i32
    return %arg0, %c0_i32 : i32, i32
  }
  func.func @transform_3(%arg0: i32) -> (i32, i32) {
    %c0_i32 = arith.constant 0 : i32
    %c0_i32_0 = arith.constant 0 : i32
    %c0_i32_1 = arith.constant 0 : i32
    return %c0_i32, %c0_i32_0 : i32, i32
  }
  func.func @transform_4(%arg0: i32) -> (i32, i32) {
    %c0_i32 = arith.constant 0 : i32
    %c0_i32_0 = arith.constant 0 : i32
    %c0_i32_1 = arith.constant 0 : i32
    return %c0_i32, %c0_i32_0 : i32, i32
  }
  func.func @transform_5(%arg0: i32) -> (i32, i32) {
    %c0_i32 = arith.constant 0 : i32
    %c0_i32_0 = arith.constant 0 : i32
    %c0_i32_1 = arith.constant 0 : i32
    return %c0_i32, %c0_i32_0 : i32, i32
  }
  func.func @transform_6(%arg0: i32) -> (i32, i32) {
    %c0_i32 = arith.constant 0 : i32
    %c0_i32_0 = arith.constant 0 : i32
    %c0_i32_1 = arith.constant 0 : i32
    return %c0_i32, %c0_i32_0 : i32, i32
  }
  func.func @transform_7(%arg0: i32) -> (i32, i32) {
    %c0_i32 = arith.constant 0 : i32
    %c0_i32_0 = arith.constant 0 : i32
    %c0_i32_1 = arith.constant 0 : i32
    return %c0_i32, %c0_i32_0 : i32, i32
  }
  func.func @transform_8(%arg0: i32) -> (i32, i32) {
    %c0_i32 = arith.constant 0 : i32
    %c0_i32_0 = arith.constant 0 : i32
    %c0_i32_1 = arith.constant 0 : i32
    return %c0_i32, %c0_i32_0 : i32, i32
  }
  func.func @transform_9(%arg0: i32) -> (i32, i32) {
    %c0_i32 = arith.constant 0 : i32
    %c0_i32_0 = arith.constant 0 : i32
    %c0_i32_1 = arith.constant 0 : i32
    return %c0_i32, %c0_i32_0 : i32, i32
  }
  func.func @transform_10(%arg0: i32) -> (i32, i32) {
    %c0_i32 = arith.constant 0 : i32
    %c0_i32_0 = arith.constant 0 : i32
    return %arg0, %c0_i32 : i32, i32
  }
}

</mosaic_0001>

<bundles_post_ra>
// kernel: tpu_custom_call.1
= control target key start
LH: loop header
LB: loop body
LE: loop exit
PB: predicated region body
PF: predicated region fallthrough
CT: control target
= control target key end

     0   :  { %15 = vsyncpa [#allocation3], 0  ;;  %s4198_s0 = inlined_call_operand.hbm [shape: bf16[32,128], index: 0, kind: input, shape index: {}]   ;;  %s4199_s1 = inlined_call_operand.hbm [shape: bf16[256,128], index: 1, kind: input, shape index: {}]   ;;  %s4200_s2 = inlined_call_operand.hbm [shape: bf16[256,128], index: 2, kind: input, shape index: {}]   ;;  %s4201_s3 = inlined_call_operand.hbm [shape: bf16[128,128], index: 3, kind: input, shape index: {}]   ;;  %s4202_s4 = inlined_call_operand.hbm [shape: bf16[128,128], index: 4, kind: input, shape index: {}]   ;;  %s4203_s5 = inlined_call_operand.hbm [shape: bf16[128,128], index: 5, kind: input, shape index: {}]   ;;  %s4204_s6 = inlined_call_operand.vmem [shape: f32[1,128], index: 6, kind: input, shape index: {}]   ;;  %s4205_s7 = inlined_call_operand.vmem [shape: f32[1,128], index: 7, kind: input, shape index: {}]   ;;  %s4206_s8 = inlined_call_operand.vmem [shape: f32[1,128], index: 8, kind: input, shape index: {}]   ;;  %s4207_s9 = inlined_call_operand.vmem [shape: bf16[8,128], index: 9, kind: input, shape index: {}]   ;;  %s4208_s10 = inlined_call_operand.hbm [shape: f32[32,128], index: 10, kind: output, shape index: {}]  }
   0x1   :  { %16 = vsyncpa [#allocation6], 0 }
   0x2   :  { %17 = vsyncpa [#allocation9], 0 }
   0x3   :  { %18 = vsyncpa [#allocation12], 0 }
   0x4   :  { %19 = vsyncpa [#allocation4], 0  ;;  %s3420_s13 = smov [#allocation5]   ;;  %s3421_s15 = smov [#allocation8]  }
   0x5   :  { %s37_s14 = sshll.u32 %s3420_s13, 4  ;;  %s61_s16 = sshll.u32 %s3421_s15, 4  ;;  %s38_s14 = int_to_ptr.vmem [resolvable:$true] %s37_s14  ;;  %s62_s16 = int_to_ptr.vmem [resolvable:$true] %s61_s16 }
   0x6   :  { %s3278_s17 = scalar_lea.vmem %s38_s14, 2048  ;;  %p3283_p1 = scmp.lt.s32.totalorder %s38_s14, %s38_s14 }
   0x7   :  { %p3279_p0 = scmp.ne.s32.totalorder %s38_s14, %s3278_s17  ;;  %p3284_p2 = scmp.lt.s32.totalorder %s3278_s17, %s3278_s17 }
   0x9   :  { %p3285_p3 = por %p3284_p2, %p3283_p1 }
   0xb   :  { %p3286_p4 = pnand %p3285_p3, %p3279_p0 }
   0xd   :  { %3289 = shalt.err (!%p3286_p4)
}
   0xe   :  { %s3422_s18 = smov 64   ;;  %s3423_s19 = smov 4  }
   0xf   :  { %43 = dma.hbm_to_vmem [thread:$0]  %s4199_s1, 2048, %s38_s14, [#allocation6], %s3422_s18, %s3422_s18, %s3423_s19  }
  0x10   :  { %s3298_s22 = scalar_lea.vmem %s62_s16, 1024  ;;  %p3303_p6 = scmp.lt.s32.totalorder %s62_s16, %s62_s16 }
  0x11   :  { %p3299_p5 = scmp.ne.s32.totalorder %s62_s16, %s3298_s22  ;;  %p3304_p7 = scmp.lt.s32.totalorder %s3298_s22, %s3298_s22 }
  0x13   :  { %p3305_p8 = por %p3304_p7, %p3303_p6 }
  0x15   :  { %p3306_p9 = pnand %p3305_p8, %p3299_p5 }
  0x17   :  { %3309 = shalt.err (!%p3306_p9)
}
  0x18   :  { %67 = dma.hbm_to_vmem [thread:$0]  %s4201_s3, 1024, %s62_s16, [#allocation9], %s3422_s18, %s3422_s18, %s3423_s19  }
  0x19   :  { %s3424_s25 = smov [#allocation2]   ;;  %s3425_s27 = smov [#allocation7]  }
  0x1a   :  { %s25_s26 = sshll.u32 %s3424_s25, 4  ;;  %s49_s28 = sshll.u32 %s3425_s27, 4  ;;  %s26_s26 = int_to_ptr.vmem [resolvable:$true] %s25_s26  ;;  %s50_s28 = int_to_ptr.vmem [resolvable:$true] %s49_s28 }
  0x1b   :  { %s3318_s1 = scalar_lea.vmem %s26_s26, 256  ;;  %p3323_p11 = scmp.lt.s32.totalorder %s26_s26, %s26_s26 }
  0x1c   :  { %p3319_p10 = scmp.ne.s32.totalorder %s26_s26, %s3318_s1  ;;  %p3324_p12 = scmp.lt.s32.totalorder %s3318_s1, %s3318_s1 }
  0x1e   :  { %p3325_p13 = por %p3324_p12, %p3323_p11 }
  0x20   :  { %p3326_p0 = pnand %p3325_p13, %p3319_p10 }
  0x22   :  { %3329 = shalt.err (!%p3326_p0)
}
  0x23   :  { %31 = dma.hbm_to_vmem [thread:$0]  %s4198_s0, 256, %s26_s26, [#allocation3], %s3422_s18, %s3422_s18, %s3423_s19  }
  0x24   :  { %s3338_s3 = scalar_lea.vmem %s50_s28, 2048  ;;  %p3343_p2 = scmp.lt.s32.totalorder %s50_s28, %s50_s28 }
  0x25   :  { %p3339_p1 = scmp.ne.s32.totalorder %s50_s28, %s3338_s3  ;;  %p3344_p3 = scmp.lt.s32.totalorder %s3338_s3, %s3338_s3 }
  0x27   :  { %p3345_p4 = por %p3344_p3, %p3343_p2 }
  0x29   :  { %p3346_p5 = pnand %p3345_p4, %p3339_p1 }
  0x2b   :  { %3349 = shalt.err (!%p3346_p5)
}
  0x2c   :  { %55 = dma.hbm_to_vmem [thread:$0]  %s4200_s2, 2048, %s50_s28, [#allocation6], %s3422_s18, %s3422_s18, %s3423_s19  }
  0x2d   :  { %s3426_s13 = smov [#allocation10]   ;;  %s3427_s15 = smov [#allocation11]  }
  0x2e   :  { %s73_s14 = sshll.u32 %s3426_s13, 4  ;;  %s85_s16 = sshll.u32 %s3427_s15, 4  ;;  %s74_s14 = int_to_ptr.vmem [resolvable:$true] %s73_s14  ;;  %s86_s16 = int_to_ptr.vmem [resolvable:$true] %s85_s16 }
  0x2f   :  { %s3358_s0 = scalar_lea.vmem %s74_s14, 1024  ;;  %p3363_p7 = scmp.lt.s32.totalorder %s74_s14, %s74_s14 }
  0x30   :  { %p3359_p6 = scmp.ne.s32.totalorder %s74_s14, %s3358_s0  ;;  %p3364_p8 = scmp.lt.s32.totalorder %s3358_s0, %s3358_s0 }
  0x32   :  { %p3365_p9 = por %p3364_p8, %p3363_p7 }
  0x34   :  { %p3366_p10 = pnand %p3365_p9, %p3359_p6 }
  0x36   :  { %3369 = shalt.err (!%p3366_p10)
}
  0x37   :  { %79 = dma.hbm_to_vmem [thread:$0]  %s4202_s4, 1024, %s74_s14, [#allocation9], %s3422_s18, %s3422_s18, %s3423_s19  }
  0x38   :  { %s3378_s2 = scalar_lea.vmem %s86_s16, 1024  ;;  %p3383_p12 = scmp.lt.s32.totalorder %s86_s16, %s86_s16 }
  0x39   :  { %p3379_p11 = scmp.ne.s32.totalorder %s86_s16, %s3378_s2  ;;  %p3384_p13 = scmp.lt.s32.totalorder %s3378_s2, %s3378_s2 }
  0x3b   :  { %p3385_p0 = por %p3384_p13, %p3383_p12 }
  0x3d   :  { %p3386_p1 = pnand %p3385_p0, %p3379_p11 }
  0x3f   :  { %3389 = shalt.err (!%p3386_p1)
}
  0x40   :  { %91 = dma.hbm_to_vmem [thread:$0]  %s4203_s5, 1024, %s86_s16, [#allocation12], %s3422_s18, %s3422_s18, %s3423_s19  }
  0x41   :  { %3410 = dma.done.wait [#allocation3], 256  }
  0x42   :  { %3411 = vsyncadd [#allocation3], 4294967040 }
  0x43   :  { %3412 = dma.done.wait [#allocation6], 4096  }
  0x44   :  { %3413 = vsyncadd [#allocation6], 4294963200 }
  0x45   :  { %3414 = dma.done.wait [#allocation9], 2048  }
  0x46   :  { %3415 = vsyncadd [#allocation9], 4294965248 }
  0x47   :  { %3416 = dma.done.wait [#allocation12], 1024  }
  0x48   :  { %3417 = vsyncadd [#allocation12], 4294966272  ;;  %v3084_v0 = vld [vmem:[#allocation8 + $0x38] sm:$0xff]   ;;  %v3086_v2 = vld [vmem:[#allocation8 + $0x30] sm:$0xff]   ;;  %v3428_v47 = vmov 1966171168   ;;  %v983_v49 = vlaneseq }
  0x49   :  { %v3085_v1 = vld [vmem:[#allocation10 + $0x38] sm:$0xff]   ;;  %2871 = vmatprep.subr.bf16.mxu0 %v3084_v0  ;;  %v3087_v3 = vld [vmem:[#allocation10 + $0x30] sm:$0xff]   ;;  %v3088_v4 = vld [vmem:[#allocation8 + $0x28] sm:$0xff]   ;;  %v981_v48 = vunpack.c.l.s4 %v3428_v47  ;;  %vm2218_vm0 = vcmask 1043456   ;;  %vm1545_vm1 = vcmask 64512   ;;  %vm2639_vm2 = vcmask 1041409  }
  0x4a   :  { %2891 = vmatprep.subr.bf16.mxu1 %v3085_v1  ;;  %2872 = vmatpush3.bf16.msra.mxu0 %v3084_v0  ;;  %v3089_v5 = vld [vmem:[#allocation10 + $0x28] sm:$0xff]   ;;  %v3090_v6 = vld [vmem:[#allocation8 + $0x20] sm:$0xff]   ;;  %v3092_v8 = vld [vmem:[#allocation8 + $0x18] sm:$0xff]   ;;  %v984_v52 = vshrl.u32 %v983_v49, 7  ;;  %vm2641_vm3 = vcmask 1042434   ;;  %vm2643_vm4 = vcmask 1043459  }
  0x4b   :  { %2892 = vmatpush3.bf16.msra.mxu1 %v3085_v1  ;;  %2873 = vmatprep.subr.bf16.mxu0 %v3086_v2  ;;  %v3091_v7 = vld [vmem:[#allocation10 + $0x20] sm:$0xff]   ;;  %v3093_v9 = vld [vmem:[#allocation10 + $0x18] sm:$0xff]   ;;  %v3094_v10 = vld [vmem:[#allocation8 + $0x10] sm:$0xff]   ;;  %v982_v51 = vunpack.c.0.s8 %v981_v48  ;;  %vm2645_vm5 = vcmask 1044484   ;;  %vm2647_vm6 = vcmask 1045509   ;;  %vm2649_vm7 = vcmask 1046534  }
  0x4c   :  { %2893 = vmatprep.subr.bf16.mxu1 %v3087_v3  ;;  %v3095_v11 = vld [vmem:[#allocation10 + $0x10] sm:$0xff]   ;;  %v3101_v13 = vld [vmem:[#allocation5] sm:$0xff]   ;;  %v3096_v14 = vld [vmem:[#allocation8 + $0x8] sm:$0xff]   ;;  %vm2651_vm8 = vcmask 1047559  }
  0x4d   :  { %v3100_v12 = vld [vmem:[#allocation2] sm:$0xff]   ;;  %2907 = vmatprep.mubr.bf16.mxu1 %v3101_v13  ;;  %v3097_v15 = vld [vmem:[#allocation10 + $0x8] sm:$0xff]   ;;  %v3098_v16 = vld [vmem:[#allocation8] sm:$0xff]   ;;  %v3538_v58 = vsub.s32 %v982_v51, %v984_v52 }
  0x4e   :  { %2874 = vmatpush3.bf16.msra.mxu0 %v3086_v2  ;;  %2887 = vmatprep.mubr.bf16.mxu0 %v3100_v12  ;;  %v3099_v17 = vld [vmem:[#allocation10] sm:$0xff]   ;;  %v3102_v18 = vld [vmem:[#allocation2 + $0x8] sm:$0xff]   ;;  %v3103_v19 = vld [vmem:[#allocation5 + $0x8] sm:$0xff]  }
  0x4f   :  { %2894 = vmatpush3.bf16.msra.mxu1 %v3087_v3  ;;  %2875 = vmatprep.subr.bf16.mxu0 %v3088_v4  ;;  %v3104_v20 = vld [vmem:[#allocation5 + $0x10] sm:$0xff]   ;;  %v3118_v21 = vld [vmem:[#allocation11 + $0x38] sm:$0xff]   ;;  %v3120_v23 = vld [vmem:[#allocation11 + $0x28] sm:$0xff]  }
  0x50   :  { %2895 = vmatprep.subr.bf16.mxu1 %v3089_v5  ;;  %v3119_v22 = vld [vmem:[#allocation11 + $0x30] sm:$0xff]   ;;  %v3105_v24 = vld [vmem:[#allocation5 + $0x18] sm:$0xff]   ;;  %v3106_v25 = vld [vmem:[#allocation5 + $0x20] sm:$0xff]  }
  0x51   :  { %v3121_v26 = vld [vmem:[#allocation11 + $0x20] sm:$0xff]   ;;  %v3122_v27 = vld [vmem:[#allocation11 + $0x18] sm:$0xff]   ;;  %v3107_v28 = vld [vmem:[#allocation5 + $0x28] sm:$0xff]  }
  0x52   :  { %2876 = vmatpush3.bf16.msra.mxu0 %v3088_v4  ;;  %v3108_v29 = vld [vmem:[#allocation5 + $0x30] sm:$0xff]   ;;  %v3124_v31 = vld [vmem:[#allocation11 + $0x8] sm:$0xff]   ;;  %v3109_v32 = vld [vmem:[#allocation5 + $0x38] sm:$0xff]  }
  0x53   :  { %2896 = vmatpush3.bf16.msra.mxu1 %v3089_v5  ;;  %2877 = vmatprep.subr.bf16.mxu0 %v3090_v6  ;;  %v3123_v30 = vld [vmem:[#allocation11 + $0x10] sm:$0xff]   ;;  %v3110_v33 = vld [vmem:[#allocation5 + $0x40] sm:$0xff]   ;;  %v3111_v35 = vld [vmem:[#allocation5 + $0x48] sm:$0xff]   ;;  %v3550_v5 = vsub.s32 0, %v984_v52 }
  0x54   :  { %2897 = vmatprep.subr.bf16.mxu1 %v3091_v7  ;;  %v3125_v34 = vld [vmem:[#allocation11] sm:$0xff]   ;;  %v3112_v36 = vld [vmem:[#allocation5 + $0x50] sm:$0xff]   ;;  %v3113_v37 = vld [vmem:[#allocation5 + $0x58] sm:$0xff]  }
  0x55   :  { %v3114_v38 = vld [vmem:[#allocation5 + $0x60] sm:$0xff]   ;;  %v3115_v39 = vld [vmem:[#allocation5 + $0x68] sm:$0xff]   ;;  %v3116_v40 = vld [vmem:[#allocation5 + $0x70] sm:$0xff]  }
  0x56   :  { %2878 = vmatpush3.bf16.msra.mxu0 %v3090_v6  ;;  %v3117_v41 = vld [vmem:[#allocation5 + $0x78] sm:$0xff]   ;;  %v3126_v42 = vld [vmem:[#allocation7 + $0x60] sm:$0xff]   ;;  %v3127_v43 = vld [vmem:[#allocation7 + $0x68] sm:$0xff]  }
  0x57   :  { %2898 = vmatpush3.bf16.msra.mxu1 %v3091_v7  ;;  %2879 = vmatprep.subr.bf16.mxu0 %v3092_v8  ;;  %v3128_v44 = vld [vmem:[#allocation7 + $0x70] sm:$0xff]   ;;  %v3129_v45 = vld [vmem:[#allocation7 + $0x78] sm:$0xff]  }
  0x58   :  { %2899 = vmatprep.subr.bf16.mxu1 %v3093_v9  ;;  %v3526_v46 = vld [vmem:[%s4207_s9] sm:$0xf] }
  0x59   :  { %v3535_v54 = vld [vmem:[%s4204_s6] ss:$0 sm:$0xff] }
  0x5a   :  { %2880 = vmatpush3.bf16.msra.mxu0 %v3092_v8  ;;  %v3547_v3 = vld [vmem:[%s4205_s7] ss:$0 sm:$0xff] }
  0x5b   :  { %2900 = vmatpush3.bf16.msra.mxu1 %v3093_v9  ;;  %2881 = vmatprep.subr.bf16.mxu0 %v3094_v10 }
  0x5c   :  { %2901 = vmatprep.subr.bf16.mxu1 %v3095_v11 }
  0x5e   :  { %2882 = vmatpush3.bf16.msra.mxu0 %v3094_v10 }
  0x5f   :  { %2902 = vmatpush3.bf16.msra.mxu1 %v3095_v11  ;;  %2883 = vmatprep.subr.bf16.mxu0 %v3096_v14 }
  0x60   :  { %2903 = vmatprep.subr.bf16.mxu1 %v3097_v15 }
  0x62   :  { %2884 = vmatpush3.bf16.msra.mxu0 %v3096_v14 }
  0x63   :  { %2904 = vmatpush3.bf16.msra.mxu1 %v3097_v15  ;;  %2885 = vmatprep.subr.bf16.mxu0 %v3098_v16 }
  0x64   :  { %2905 = vmatprep.subr.bf16.mxu1 %v3099_v17 }
  0x66   :  { %2886 = vmatpush3.bf16.msra.mxu0 %v3098_v16 }
  0x67   :  { %2906 = vmatpush3.bf16.msra.mxu1 %v3099_v17  ;;  %2939 = vmatprep.subr.bf16.mxu0 %v3118_v21 }
  0x68   :  { %3055 = vmatprep.subr.bf16.mxu1 %v3118_v21 }
  0x69   :  { %2888 = vmatmul.mubr.bf16.vlgmr.msra.gmra.mxu0 %v3102_v18 }
  0x6a   :  { %2908 = vmatmul.mubr.bf16.vlgmr.msra.gmra.mxu1 %v3103_v19  ;;  %2940 = vmatpush3.bf16.msra.mxu0 %v3118_v21 }
  0x6b   :  { %2911 = vmatprep.mubr.bf16.mxu1 %v3104_v20  ;;  %3063 = vmatpush3.bf16.msra.mxu1 %v3118_v21 }
  0x6c   :  { %3056 = vmatprep.subr.bf16.mxu1 %v3119_v22  ;;  %2941 = vmatprep.subr.bf16.mxu0 %v3119_v22 }
  0x6e   :  { %2942 = vmatpush3.bf16.msra.mxu0 %v3119_v22 }
  0x6f   :  { %3064 = vmatpush3.bf16.msra.mxu1 %v3119_v22  ;;  %2943 = vmatprep.subr.bf16.mxu0 %v3120_v23 }
  0x70   :  { %3057 = vmatprep.subr.bf16.mxu1 %v3120_v23 }
  0x72   :  { %2912 = vmatmul.mubr.bf16.gmra.mxu1 %v3105_v24  ;;  %2944 = vmatpush3.bf16.msra.mxu0 %v3120_v23 }
  0x73   :  { %2915 = vmatprep.mubr.bf16.mxu1 %v3106_v25  ;;  %3065 = vmatpush3.bf16.msra.mxu1 %v3120_v23 }
  0x74   :  { %3058 = vmatprep.subr.bf16.mxu1 %v3121_v26  ;;  %2945 = vmatprep.subr.bf16.mxu0 %v3121_v26 }
  0x76   :  { %2946 = vmatpush3.bf16.msra.mxu0 %v3121_v26 }
  0x77   :  { %3066 = vmatpush3.bf16.msra.mxu1 %v3121_v26  ;;  %2947 = vmatprep.subr.bf16.mxu0 %v3122_v27 }
  0x78   :  { %3059 = vmatprep.subr.bf16.mxu1 %v3122_v27 }
  0x7a   :  { %2916 = vmatmul.mubr.bf16.gmra.mxu1 %v3107_v28  ;;  %2948 = vmatpush3.bf16.msra.mxu0 %v3122_v27 }
  0x7b   :  { %2919 = vmatprep.mubr.bf16.mxu1 %v3108_v29  ;;  %3067 = vmatpush3.bf16.msra.mxu1 %v3122_v27 }
  0x7c   :  { %3060 = vmatprep.subr.bf16.mxu1 %v3123_v30  ;;  %2949 = vmatprep.subr.bf16.mxu0 %v3123_v30 }
  0x7e   :  { %2950 = vmatpush3.bf16.msra.mxu0 %v3123_v30 }
  0x7f   :  { %3068 = vmatpush3.bf16.msra.mxu1 %v3123_v30  ;;  %2951 = vmatprep.subr.bf16.mxu0 %v3124_v31 }
  0x80   :  { %3061 = vmatprep.subr.bf16.mxu1 %v3124_v31 }
  0x82   :  { %2920 = vmatmul.mubr.bf16.gmra.mxu1 %v3109_v32  ;;  %2952 = vmatpush3.bf16.msra.mxu0 %v3124_v31 }
  0x83   :  { %2923 = vmatprep.mubr.bf16.mxu1 %v3110_v33  ;;  %3069 = vmatpush3.bf16.msra.mxu1 %v3124_v31 }
  0x84   :  { %3062 = vmatprep.subr.bf16.mxu1 %v3125_v34  ;;  %2953 = vmatprep.subr.bf16.mxu0 %v3125_v34 }
  0x86   :  { %2954 = vmatpush3.bf16.msra.mxu0 %v3125_v34 }
  0x87   :  { %3070 = vmatpush3.bf16.msra.mxu1 %v3125_v34  ;;  %3071 = vmatprep.subr.msk.bf16.mxu0 %vm2218_vm0, %v3526_v46 }
  0x88   :  { %2987 = vmatprep.subr.bf16.mxu1 %v3526_v46 }
  0x8a   :  { %2924 = vmatmul.mubr.bf16.gmra.mxu1 %v3111_v35 }
  0x8b   :  { %2927 = vmatprep.mubr.bf16.mxu1 %v3112_v36 }
  0x92   :  { %2928 = vmatmul.mubr.bf16.gmra.mxu1 %v3113_v37 }
  0x93   :  { %2931 = vmatprep.mubr.bf16.mxu1 %v3114_v38 }
  0x9a   :  { %2932 = vmatmul.mubr.bf16.gmra.mxu1 %v3115_v39 }
  0x9b   :  { %2935 = vmatprep.mubr.bf16.mxu1 %v3116_v40 }
  0xa2   :  { %2936 = vmatmul.mubr.bf16.gmra.mxu1 %v3117_v41 }
  0xa3   :  { %2979 = vmatprep.mubr.bf16.mxu1 %v3126_v42 }
  0xaa   :  { %2980 = vmatmul.mubr.bf16.vlgmr.msra.gmra.mxu1 %v3127_v43 }
  0xab   :  { %2983 = vmatprep.mubr.bf16.mxu1 %v3128_v44  ;;  %2988 = vmatpush3.bf16.xpose.msra.mxu1 %v3526_v46 }
  0xb2   :  { %2984 = vmatmul.mubr.bf16.gmra.mxu1 %v3129_v45 }
 0x129   :  { %v3530_v50 = vpop.f32.mrf.mxu0 }
 0x12a   :  { %v2909_v53 = vpop.f32.mrf.mxu1 }
 0x12b   :  { %v240_v55 = vpop.f32.mrf.mxu0  ;;  %v497_v12 = vadd.f32 %v2909_v53, %v3547_v3 }
 0x12c   :  { %v241_v56 = vadd.f32 %v3535_v54, %v240_v55  ;;  %v488_v57 = vpop.f32.mrf.mxu1 }
 0x12d   :  { %v3540_v59 = vpop.f32.mrf.mxu0  ;;  %v489_v17 = vadd.f32 %v3547_v3, %v488_v57 }
 0x12e   :  { %v979_v60 = vcombine.high %v241_v56, %v241_v56  ;;  %v2910_v61 = vpop.f32.mrf.mxu1  ;;  %v986_v62 = vrot.slane %v241_v56, %v3538_v58  ;;  %v249_v56 = vadd.f32 %v3530_v50, %v3535_v54 }
 0x12f   :  { %v243_v63 = vpop.f32.mrf.mxu0  ;;  %v500_v20 = vadd.f32 %v2910_v61, %v3547_v3 }
 0x130   :  { %v491_v0 = vpop.f32.mrf.mxu1  ;;  %v994_v1 = vcombine.high %v986_v62, %v986_v62  ;;  %v1002_v2 = vrot.slane %v986_v62, %v3538_v58  ;;  %v993_v4 = vrot.slane %v979_v60, %v3538_v58  ;;  %v244_v6 = vadd.f32 %v3535_v54, %v243_v63 }
 0x131   :  { %v492_v22 = vadd.f32 %v3547_v3, %v491_v0 }
 0x132   :  { %v2913_v7 = vpop.f32.mrf.mxu1  ;;  %v1016_v8 = vrot.slane %v994_v1, %v3538_v58  ;;  %v1024_v9 = vcombine.high %v1002_v2, %v1002_v2  ;;  %v1178_v10 = vrot.slane %v1002_v2, %v3550_v5  ;;  %v1035_v14 = vrot.slane %v244_v6, %v3538_v58 }
 0x133   :  { %v995_v15 = vcombine.high %v993_v4, %v993_v4  ;;  %v1009_v16 = vrot.slane %v993_v4, %v3538_v58  ;;  %v1028_v25 = vcombine.high %v244_v6, %v244_v6  ;;  %v513_v52 = vadd.f32 %v2913_v7, %v3547_v3 }
 0x134   :  { %v504_v11 = vpop.f32.mrf.mxu1  ;;  %v1026_v13 = vcombine.high %v1016_v8, %v1016_v8  ;;  %v1186_v18 = vrot.slane %v1024_v9, %v3550_v5  ;;  %v1182_v23 = vrot.slane %v1016_v8, %v3550_v5  ;;  %v1335_v24 = vmul.f32 %v1178_v10, %v489_v17 }
 0x135   :  { %v1043_v29 = vcombine.high %v1035_v14, %v1035_v14  ;;  %v505_v31 = vadd.f32 %v3547_v3, %v504_v11  ;;  %v1194_v32 = vrot.slane %v1009_v16, %v3550_v5  ;;  %v1023_v33 = vrot.slane %v995_v15, %v3538_v58 }
 0x136   :  { %v2914_v19 = vpop.f32.mrf.mxu1  ;;  %v1190_v21 = vrot.slane %v1026_v13, %v3550_v5  ;;  %v1337_v27 = vmul.f32 %v1186_v18, %v497_v12  ;;  %v1336_v30 = vmul.f32 %v1182_v23, %v492_v22  ;;  %v1025_v37 = vcombine.high %v1009_v16, %v1009_v16 }
 0x137   :  { %v1042_v38 = vrot.slane %v1028_v25, %v3538_v58  ;;  %v1027_v39 = vcombine.high %v1023_v33, %v1023_v33  ;;  %v1198_v40 = vrot.slane %v1023_v33, %v3550_v5  ;;  %v1051_v43 = vrot.slane %v1035_v14, %v3538_v58 }
 0x138   :  { %v507_v26 = vpop.f32.mrf.mxu1  ;;  %v1338_v28 = vmul.f32 %v1190_v21, %v500_v20  ;;  %v1367_v41 = vpack.c.bf16 %v1336_v30, %v1335_v24  ;;  %v1065_v44 = vrot.slane %v1043_v29, %v3538_v58  ;;  %v516_v45 = vadd.f32 %v2914_v19, %v3547_v3 }
 0x139   :  { %v508_v34 = vadd.f32 %v3547_v3, %v507_v26  ;;  %v1339_v47 = vmul.f32 %v1194_v32, %v505_v31  ;;  %v1206_v48 = vrot.slane %v1027_v39, %v3550_v5  ;;  %v1202_v53 = vrot.slane %v1025_v37, %v3550_v5 }
 0x13a   :  { %v2917_v35 = vpop.f32.mrf.mxu1  ;;  %v1368_v36 = vpack.c.bf16 %v1338_v28, %v1337_v27  ;;  %2989 = vmatprep.mubr.bf16.mxu1 %v1367_v41  ;;  %v1044_v57 = vcombine.high %v1042_v38, %v1042_v38  ;;  %v1210_v63 = vrot.slane %v1051_v43, %v3550_v5  ;;  %v1214_v1 = vrot.slane %v1065_v44, %v3550_v5 }
 0x13b   :  { %v1340_v49 = vmul.f32 %v1198_v40, %v508_v34  ;;  %v1342_v62 = vmul.f32 %v1206_v48, %v516_v45  ;;  %v1341_v4 = vmul.f32 %v1202_v53, %v513_v52  ;;  %v1075_v7 = vcombine.high %v1065_v44, %v1065_v44 }
 0x13c   :  { %v520_v42 = vpop.f32.mrf.mxu1  ;;  %2990 = vmatmul.mubr.bf16.vlgmr.msra.gmra.mxu1 %v1368_v36  ;;  %v1084_v9 = vrot.slane %v249_v56, %v3538_v58  ;;  %v1058_v50 = vrot.slane %v1042_v38, %v3538_v58  ;;  %v1073_v10 = vcombine.high %v1051_v43, %v1051_v43  ;;  %v1072_v14 = vrot.slane %v1044_v57, %v3538_v58 }
 0x13d   :  { %v521_v55 = vadd.f32 %v3547_v3, %v520_v42  ;;  %v1369_v60 = vpack.c.bf16 %v1340_v49, %v1339_v47  ;;  %v1370_v13 = vpack.c.bf16 %v1342_v62, %v1341_v4  ;;  %v529_v17 = vadd.f32 %v2917_v35, %v3547_v3 }
 0x13e   :  { %v2918_v51 = vpop.f32.mrf.mxu1  ;;  %v1222_v18 = vrot.slane %v1075_v7, %v3550_v5  ;;  %v1077_v20 = vcombine.high %v249_v56, %v249_v56  ;;  %v1092_v21 = vcombine.high %v1084_v9, %v1084_v9  ;;  %v1218_v22 = vrot.slane %v1073_v10, %v3550_v5 }
 0x13f   :  { %2993 = vmatprep.mubr.bf16.mxu1 %v1369_v60  ;;  %v1343_v6 = vmul.f32 %v1210_v63, %v521_v55  ;;  %v532_v12 = vadd.f32 %v2918_v51, %v3547_v3  ;;  %v1226_v25 = vrot.slane %v1058_v50, %v3550_v5  ;;  %v1230_v27 = vrot.slane %v1072_v14, %v3550_v5 }
 0x140   :  { %v523_v61 = vpop.f32.mrf.mxu1  ;;  %v1345_v29 = vmul.f32 %v1218_v22, %v529_v17  ;;  %v1076_v31 = vcombine.high %v1072_v14, %v1072_v14  ;;  %v1091_v33 = vrot.slane %v1077_v20, %v3538_v58  ;;  %v1100_v34 = vrot.slane %v1084_v9, %v3538_v58 }
 0x141   :  { %v524_v0 = vadd.f32 %v3547_v3, %v523_v61  ;;  %v1346_v24 = vmul.f32 %v1222_v18, %v532_v12  ;;  %v1074_v35 = vcombine.high %v1058_v50, %v1058_v50  ;;  %v1114_v37 = vrot.slane %v1092_v21, %v3538_v58 }
 0x142   :  { %v2921_v2 = vpop.f32.mrf.mxu1  ;;  %v1238_v43 = vrot.slane %v1076_v31, %v3550_v5  ;;  %v1093_v45 = vcombine.high %v1091_v33, %v1091_v33  ;;  %v252_v47 = vadd.f32 %v3540_v59, %v3535_v54  ;;  %v1242_v52 = vrot.slane %v1100_v34, %v3550_v5 }
 0x143   :  { %v1344_v8 = vmul.f32 %v1214_v1, %v524_v0  ;;  %v1372_v39 = vpack.c.bf16 %v1346_v24, %v1345_v29  ;;  %v545_v42 = vadd.f32 %v2921_v2, %v3547_v3  ;;  %v1234_v48 = vrot.slane %v1074_v35, %v3550_v5 }
 0x144   :  { %v536_v11 = vpop.f32.mrf.mxu1  ;;  %2994 = vmatmul.mubr.bf16.gmra.mxu1 %v1370_v13  ;;  %v1246_v55 = vrot.slane %v1114_v37, %v3550_v5  ;;  %v1124_v61 = vcombine.high %v1114_v37, %v1114_v37  ;;  %v1107_v63 = vrot.slane %v1091_v33, %v3538_v58  ;;  %v1133_v54 = vrot.slane %v252_v47, %v3538_v58 }
 0x145   :  { %v1371_v15 = vpack.c.bf16 %v1344_v8, %v1343_v6  ;;  %v537_v19 = vadd.f32 %v3547_v3, %v536_v11  ;;  %v1349_v57 = vmul.f32 %v1234_v48, %v545_v42  ;;  %v1122_v59 = vcombine.high %v1100_v34, %v1100_v34 }
 0x146   :  { %v2922_v16 = vpop.f32.mrf.mxu1  ;;  %v1121_v4 = vrot.slane %v1093_v45, %v3538_v58  ;;  %v1254_v9 = vrot.slane %v1124_v61, %v3550_v5  ;;  %v1126_v10 = vcombine.high %v252_v47, %v252_v47  ;;  %v1141_v11 = vcombine.high %v1133_v54, %v1133_v54 }
 0x147   :  { %2997 = vmatprep.mubr.bf16.mxu1 %v1371_v15  ;;  %v1347_v30 = vmul.f32 %v1226_v25, %v537_v19  ;;  %v548_v38 = vadd.f32 %v2922_v16, %v3547_v3  ;;  %v1250_v12 = vrot.slane %v1122_v59, %v3550_v5  ;;  %v1258_v15 = vrot.slane %v1107_v63, %v3550_v5 }
 0x148   :  { %v539_v23 = vpop.f32.mrf.mxu1  ;;  %v1262_v17 = vrot.slane %v1121_v4, %v3550_v5  ;;  %v1125_v21 = vcombine.high %v1121_v4, %v1121_v4  ;;  %v1149_v24 = vrot.slane %v1133_v54, %v3538_v58  ;;  %v1163_v25 = vrot.slane %v1141_v11, %v3538_v58 }
 0x149   :  { %v540_v26 = vadd.f32 %v3547_v3, %v539_v23  ;;  %v1350_v51 = vmul.f32 %v1238_v43, %v548_v38  ;;  %v1140_v23 = vrot.slane %v1126_v10, %v3538_v58 }
 0x14a   :  { %v2925_v28 = vpop.f32.mrf.mxu1  ;;  %v1270_v33 = vrot.slane %v1125_v21, %v3550_v5  ;;  %v1173_v45 = vcombine.high %v1163_v25, %v1163_v25  ;;  %v3134_v21 = vld [vmem:[#allocation7 + $0x20] sm:$0xff]  }
 0x14b   :  { %v1348_v32 = vmul.f32 %v1230_v27, %v540_v26  ;;  %v1374_v2 = vpack.c.bf16 %v1350_v51, %v1349_v57  ;;  %v561_v8 = vadd.f32 %v2925_v28, %v3547_v3  ;;  %v1123_v27 = vcombine.high %v1107_v63, %v1107_v63 }
 0x14c   :  { %v552_v36 = vpop.f32.mrf.mxu1  ;;  %2998 = vmatmul.mubr.bf16.gmra.mxu1 %v1372_v39  ;;  %v1142_v35 = vcombine.high %v1140_v23, %v1140_v23  ;;  %v1156_v48 = vrot.slane %v1140_v23, %v3538_v58  ;;  %v1286_v61 = vrot.slane %v1173_v45, %v3550_v5  ;;  %v3137_v23 = vld [vmem:[#allocation7 + $0x38] sm:$0xff]  }
 0x14d   :  { %v1373_v40 = vpack.c.bf16 %v1348_v32, %v1347_v30  ;;  %v553_v44 = vadd.f32 %v3547_v3, %v552_v36  ;;  %v1353_v19 = vmul.f32 %v1250_v12, %v561_v8  ;;  %v1274_v36 = vrot.slane %v1149_v24, %v3550_v5 }
 0x14e   :  { %v2926_v41 = vpop.f32.mrf.mxu1  ;;  %v1266_v38 = vrot.slane %v1123_v27, %v3550_v5  ;;  %v1172_v8 = vcombine.high %v1156_v48, %v1156_v48 }
 0x14f   :  { %3001 = vmatprep.mubr.bf16.mxu1 %v1373_v40  ;;  %v1351_v60 = vmul.f32 %v1242_v52, %v553_v44  ;;  %v564_v1 = vadd.f32 %v2926_v41, %v3547_v3  ;;  %v1278_v41 = vrot.slane %v1163_v25, %v3550_v5  ;;  %v3139_v25 = vld [vmem:[#allocation7 + $0x48] sm:$0xff]  }
 0x150   :  { %v555_v49 = vpop.f32.mrf.mxu1 }
 0x151   :  { %v556_v53 = vadd.f32 %v3547_v3, %v555_v49  ;;  %v1354_v14 = vmul.f32 %v1254_v9, %v564_v1  ;;  %v1171_v49 = vcombine.high %v1149_v24, %v1149_v24  ;;  %v3138_v24 = vld [vmem:[#allocation7 + $0x40] sm:$0xff]  }
 0x152   :  { %v2929_v56 = vpop.f32.mrf.mxu1 }
 0x153   :  { %v1352_v62 = vmul.f32 %v1246_v55, %v556_v53  ;;  %v1376_v29 = vpack.c.bf16 %v1354_v14, %v1353_v19  ;;  %v577_v32 = vadd.f32 %v2929_v56, %v3547_v3  ;;  %v1170_v55 = vrot.slane %v1142_v35, %v3538_v58  ;;  %v3132_v19 = vld [vmem:[#allocation7 + $0x10] sm:$0xff]  }
 0x154   :  { %v568_v0 = vpop.f32.mrf.mxu1  ;;  %3002 = vmatmul.mubr.bf16.gmra.mxu1 %v1374_v2  ;;  %v1282_v63 = vrot.slane %v1171_v49, %v3550_v5 }
 0x155   :  { %v1375_v6 = vpack.c.bf16 %v1352_v62, %v1351_v60  ;;  %v569_v50 = vadd.f32 %v3547_v3, %v568_v0  ;;  %v1357_v43 = vmul.f32 %v1266_v38, %v577_v32  ;;  %v1290_v0 = vrot.slane %v1156_v48, %v3550_v5 }
 0x156   :  { %v2930_v7 = vpop.f32.mrf.mxu1  ;;  %v1294_v58 = vrot.slane %v1170_v55, %v3550_v5 }
 0x157   :  { %3005 = vmatprep.mubr.bf16.mxu1 %v1375_v6  ;;  %v1355_v20 = vmul.f32 %v1258_v15, %v569_v50  ;;  %v580_v28 = vadd.f32 %v2930_v7, %v3547_v3  ;;  %v1174_v6 = vcombine.high %v1170_v55, %v1170_v55 }
 0x158   :  { %v571_v13 = vpop.f32.mrf.mxu1 }
 0x159   :  { %v572_v16 = vadd.f32 %v3547_v3, %v571_v13  ;;  %v1358_v39 = vmul.f32 %v1270_v33, %v580_v28  ;;  %v1302_v12 = vrot.slane %v1174_v6, %v3550_v5  ;;  %v1298_v13 = vrot.slane %v1172_v8, %v3550_v5  ;;  %v3136_v5 = vld [vmem:[#allocation7 + $0x30] sm:$0xff]  }
 0x15a   :  { %v2933_v18 = vpop.f32.mrf.mxu1 }
 0x15b   :  { %v1356_v22 = vmul.f32 %v1262_v17, %v572_v16  ;;  %v1378_v53 = vpack.c.bf16 %v1358_v39, %v1357_v43  ;;  %v593_v60 = vadd.f32 %v2933_v18, %v3547_v3  ;;  %v3130_v17 = vld [vmem:[#allocation7] sm:$0xff]   ;;  %v3131_v18 = vld [vmem:[#allocation7 + $0x8] sm:$0xff]  }
 0x15c   :  { %v584_v26 = vpop.f32.mrf.mxu1  ;;  %3006 = vmatmul.mubr.bf16.gmra.mxu1 %v1376_v29  ;;  %2955 = vmatprep.mubr.bf16.mxu0 %v3130_v17 }
 0x15d   :  { %v1377_v30 = vpack.c.bf16 %v1356_v22, %v1355_v20  ;;  %v585_v34 = vadd.f32 %v3547_v3, %v584_v26  ;;  %v1361_v2 = vmul.f32 %v1282_v63, %v593_v60  ;;  %2956 = vmatmul.mubr.bf16.vlgmr.msra.gmra.mxu0 %v3131_v18  ;;  %v3133_v20 = vld [vmem:[#allocation7 + $0x18] sm:$0xff]   ;;  %v2220_v22 = vsel %vm2218_vm0, %v3526_v46, 0 }
 0x15e   :  { %v2934_v31 = vpop.f32.mrf.mxu1  ;;  %2959 = vmatprep.mubr.bf16.mxu0 %v3132_v19  ;;  %3022 = vmatpush3.bf16.msra.mxu0 %v2220_v22  ;;  %v3141_v46 = vld [vmem:[#allocation7 + $0x58] sm:$0xff]  }
 0x15f   :  { %3009 = vmatprep.mubr.bf16.mxu1 %v1377_v30  ;;  %v1359_v44 = vmul.f32 %v1274_v36, %v585_v34  ;;  %v596_v52 = vadd.f32 %v2934_v31, %v3547_v3  ;;  %v3140_v30 = vld [vmem:[#allocation7 + $0x50] sm:$0xff]  }
 0x160   :  { %v587_v37 = vpop.f32.mrf.mxu1 }
 0x161   :  { %v588_v40 = vadd.f32 %v3547_v3, %v587_v37  ;;  %v1362_v59 = vmul.f32 %v1286_v61, %v596_v52 }
 0x162   :  { %v2937_v42 = vpop.f32.mrf.mxu1 }
 0x163   :  { %v1360_v47 = vmul.f32 %v1278_v41, %v588_v40  ;;  %v1380_v50 = vpack.c.bf16 %v1362_v59, %v1361_v2  ;;  %v609_v11 = vadd.f32 %v2937_v42, %v3547_v3 }
 0x164   :  { %v600_v51 = vpop.f32.mrf.mxu1  ;;  %3010 = vmatmul.mubr.bf16.gmra.mxu1 %v1378_v53 }
 0x165   :  { %v1379_v56 = vpack.c.bf16 %v1360_v47, %v1359_v44  ;;  %v601_v62 = vadd.f32 %v3547_v3, %v600_v51  ;;  %v1365_v15 = vmul.f32 %v1298_v13, %v609_v11  ;;  %2960 = vmatmul.mubr.bf16.gmra.mxu0 %v3133_v20 }
 0x166   :  { %v2938_v57 = vpop.f32.mrf.mxu1  ;;  %2963 = vmatprep.mubr.bf16.mxu0 %v3134_v21 }
 0x167   :  { %3013 = vmatprep.mubr.bf16.mxu1 %v1379_v56  ;;  %v1363_v4 = vmul.f32 %v1290_v0, %v601_v62  ;;  %v612_v9 = vadd.f32 %v2938_v57, %v3547_v3 }
 0x168   :  { %v603_v54 = vpop.f32.mrf.mxu1 }
 0x169   :  { %v604_v1 = vadd.f32 %v3547_v3, %v603_v54  ;;  %v1366_v14 = vmul.f32 %v1302_v12, %v612_v9  ;;  %v3135_v3 = vld [vmem:[#allocation7 + $0x28] sm:$0xff]  }
 0x16a   :  { %v3644_v26 = vpop.f32.mrf.mxu1 }
 0x16b   :  { %v1364_v7 = vmul.f32 %v1294_v58, %v604_v1  ;;  %v1382_v16 = vpack.c.bf16 %v1366_v14, %v1365_v15  ;;  %4220 = vst [vmem:[#allocation19_spill] sm:$0xff] %v3644_v26 }
 0x16c   :  { %3014 = vmatmul.mubr.bf16.gmra.mxu1 %v1380_v50  ;;  %v3646_v27 = vpop.f32.mrf.mxu1 }
 0x16d   :  { %v1381_v10 = vpack.c.bf16 %v1364_v7, %v1363_v4  ;;  %2964 = vmatmul.mubr.bf16.gmra.mxu0 %v3135_v3  ;;  %4221 = vst [vmem:[#allocation20_spill] sm:$0xff] %v3646_v27 }
 0x16e   :  { %2967 = vmatprep.mubr.bf16.mxu0 %v3136_v5  ;;  %v3648_v28 = vpop.f32.mrf.mxu1 }
 0x16f   :  { %3017 = vmatprep.mubr.bf16.mxu1 %v1381_v10  ;;  %4222 = vst [vmem:[#allocation21_spill] sm:$0xff] %v3648_v28 }
 0x170   :  { %v3650_v29 = vpop.f32.mrf.mxu1 }
 0x171   :  { %4223 = vst [vmem:[#allocation22_spill] sm:$0xff] %v3650_v29 }
 0x172   :  { %v3652_v31 = vpop.f32.mrf.mxu1 }
 0x173   :  { %4224 = vst [vmem:[#allocation23_spill] sm:$0xff] %v3652_v31 }
 0x174   :  { %3018 = vmatmul.mubr.bf16.gmra.mxu1 %v1382_v16  ;;  %v3654_v32 = vpop.f32.mrf.mxu1 }
 0x175   :  { %2968 = vmatmul.mubr.bf16.gmra.mxu0 %v3137_v23  ;;  %4225 = vst [vmem:[#allocation24_spill] sm:$0xff] %v3654_v32 }
 0x176   :  { %2971 = vmatprep.mubr.bf16.mxu0 %v3138_v24  ;;  %v3656_v33 = vpop.f32.mrf.mxu1 }
 0x177   :  { %4226 = vst [vmem:[#allocation25_spill] sm:$0xff] %v3656_v33 }
 0x178   :  { %v3658_v34 = vpop.f32.mrf.mxu1 }
 0x179   :  { %4227 = vst [vmem:[#allocation26_spill] sm:$0xff] %v3658_v34 }
 0x17d   :  { %2972 = vmatmul.mubr.bf16.gmra.mxu0 %v3139_v25 }
 0x17e   :  { %2975 = vmatprep.mubr.bf16.mxu0 %v3140_v30 }
 0x185   :  { %2976 = vmatmul.mubr.bf16.gmra.mxu0 %v3141_v46 }
 0x1fc   :  { %v2991_v35 = vpop.f32.mrf.mxu1 }
 0x1fd   :  { %v1560_v36 = vsel %vm1545_vm1, %v2991_v35, -inf }
 0x1fe   :  { %v1561_v37 = vrot.slane %v1560_v36, 4  ;;  %v1418_v38 = vpop.f32.mrf.mxu1 }
 0x1ff   :  { %v1546_v39 = vsel %vm1545_vm1, %v1418_v38, -inf }
 0x200   :  { %v1562_v40 = vmax.f32 %v1560_v36, %v1561_v37  ;;  %v1547_v41 = vrot.slane %v1546_v39, 4  ;;  %v2992_v42 = vpop.f32.mrf.mxu1 }
 0x201   :  { %v1567_v43 = vsel %vm1545_vm1, %v2992_v42, -inf }
 0x202   :  { %v1563_v44 = vrot.slane %v1562_v40, 2  ;;  %v1548_v45 = vmax.f32 %v1546_v39, %v1547_v41  ;;  %v1568_v47 = vrot.slane %v1567_v43, 4  ;;  %v1421_v48 = vpop.f32.mrf.mxu1 }
 0x203   :  { %v1553_v49 = vsel %vm1545_vm1, %v1421_v48, -inf }
 0x204   :  { %v1564_v51 = vmax.f32 %v1562_v40, %v1563_v44  ;;  %v1549_v52 = vrot.slane %v1548_v45, 2  ;;  %v1569_v53 = vmax.f32 %v1567_v43, %v1568_v47  ;;  %v1554_v55 = vrot.slane %v1553_v49, 4  ;;  %v3664_v56 = vpop.f32.mrf.mxu1 }
 0x205   :  { %v1588_v57 = vsel %vm1545_vm1, %v3664_v56, -inf }
 0x206   :  { %v1565_v60 = vrot.slane %v1564_v51, 1  ;;  %v1550_v61 = vmax.f32 %v1548_v45, %v1549_v52  ;;  %v1570_v62 = vrot.slane %v1569_v53, 2  ;;  %v1555_v63 = vmax.f32 %v1553_v49, %v1554_v55  ;;  %v3668_v54 = vpop.f32.mrf.mxu1 }
 0x207   :  { %v1589_v59 = vrot.slane %v1588_v57, 4  ;;  %v1574_v0 = vsel %vm1545_vm1, %v3668_v54, -inf }
 0x208   :  { %v1566_v1 = vmax.f32 %v1564_v51, %v1565_v60  ;;  %v1551_v58 = vrot.slane %v1550_v61, 1  ;;  %v1571_v2 = vmax.f32 %v1569_v53, %v1570_v62  ;;  %v1556_v4 = vrot.slane %v1555_v63, 2  ;;  %v3672_v6 = vpop.f32.mrf.mxu1 }
 0x209   :  { %v1590_v7 = vmax.f32 %v1588_v57, %v1589_v59  ;;  %v1575_v8 = vrot.slane %v1574_v0, 4  ;;  %v1595_v9 = vsel %vm1545_vm1, %v3672_v6, -inf }
 0x20a   :  { %v1772_v50 = vsub.f32 %v2991_v35, %v1566_v1  ;;  %v1552_v10 = vmax.f32 %v1550_v61, %v1551_v58  ;;  %v1572_v11 = vrot.slane %v1571_v2, 1  ;;  %v1557_v12 = vmax.f32 %v1555_v63, %v1556_v4  ;;  %v3676_v13 = vpop.f32.mrf.mxu1 }
 0x20b   :  { %v1591_v14 = vrot.slane %v1590_v7, 2  ;;  %v1576_v15 = vmax.f32 %v1574_v0, %v1575_v8  ;;  %v1596_v16 = vrot.slane %v1595_v9, 4  ;;  %v1581_v17 = vsel %vm1545_vm1, %v3676_v13, -inf }
 0x20c   :  { %v1806_v18 = vmul.f32 1.442695, %v1772_v50  ;;  %v1770_v19 = vsub.f32 %v1418_v38, %v1552_v10  ;;  %v1573_v20 = vmax.f32 %v1571_v2, %v1572_v11  ;;  %v1558_v21 = vrot.slane %v1557_v12, 1  ;;  %v3680_v3 = vpop.f32.mrf.mxu1 }
 0x20d   :  { %v1592_v5 = vmax.f32 %v1590_v7, %v1591_v14  ;;  %v1577_v22 = vrot.slane %v1576_v15, 2  ;;  %v1597_v23 = vmax.f32 %v1595_v9, %v1596_v16  ;;  %v1582_v24 = vrot.slane %v1581_v17, 4 }
 0x20e   :  { %3142 = vpow2.f32 %v1806_v18  ;;  %v1802_v25 = vmul.f32 1.442695, %v1770_v19  ;;  %v1773_v30 = vsub.f32 %v2992_v42, %v1573_v20  ;;  %v1559_v46 = vmax.f32 %v1557_v12, %v1558_v21  ;;  %v3682_v35 = vpop.f32.mrf.mxu1 }
 0x20f   :  { %v1593_v36 = vrot.slane %v1592_v5, 1  ;;  %v1578_v37 = vmax.f32 %v1576_v15, %v1577_v22  ;;  %v1598_v39 = vrot.slane %v1597_v23, 2  ;;  %v1583_v40 = vmax.f32 %v1581_v17, %v1582_v24 }
 0x210   :  { %3144 = vpow2.f32 %v1802_v25  ;;  %v1808_v38 = vmul.f32 1.442695, %v1773_v30  ;;  %v1771_v41 = vsub.f32 %v1421_v48, %v1559_v46  ;;  %v1616_v43 = vsel %vm1545_vm1, %v3680_v3, -inf  ;;  %v3686_v44 = vpop.f32.mrf.mxu1 }
 0x211   :  { %v1594_v45 = vmax.f32 %v1592_v5, %v1593_v36  ;;  %v1579_v47 = vrot.slane %v1578_v37, 1  ;;  %v1599_v49 = vmax.f32 %v1597_v23, %v1598_v39  ;;  %v1584_v51 = vrot.slane %v1583_v40, 2 }
 0x212   :  { %3146 = vpow2.f32 %v1808_v38  ;;  %v1804_v42 = vmul.f32 1.442695, %v1771_v41  ;;  %v1617_v52 = vrot.slane %v1616_v43, 4  ;;  %v1602_v53 = vsel %vm1545_vm1, %v3682_v35, -inf  ;;  %v3691_v61 = vpop.f32.mrf.mxu1 }
 0x213   :  { %v1776_v55 = vsub.f32 %v3664_v56, %v1594_v45  ;;  %v1580_v57 = vmax.f32 %v1578_v37, %v1579_v47  ;;  %v1600_v60 = vrot.slane %v1599_v49, 1  ;;  %v1585_v48 = vmax.f32 %v1583_v40, %v1584_v51 }
 0x214   :  { %3148 = vpow2.f32 %v1804_v42  ;;  %v1618_v62 = vmax.f32 %v1616_v43, %v1617_v52  ;;  %v1603_v63 = vrot.slane %v1602_v53, 4  ;;  %v1623_v59 = vsel %vm1545_vm1, %v3686_v44, -inf  ;;  %v3699_v16 = vpop.f32.mrf.mxu1 }
 0x215   :  { %v1814_v0 = vmul.f32 1.442695, %v1776_v55  ;;  %v1774_v1 = vsub.f32 %v3668_v54, %v1580_v57  ;;  %v1601_v58 = vmax.f32 %v1599_v49, %v1600_v60  ;;  %v1586_v2 = vrot.slane %v1585_v48, 1 }
 0x216   :  { %v1619_v4 = vrot.slane %v1618_v62, 2  ;;  %v1604_v7 = vmax.f32 %v1602_v53, %v1603_v63  ;;  %v1624_v8 = vrot.slane %v1623_v59, 4  ;;  %v1609_v56 = vsel %vm1545_vm1, %v3691_v61, -inf  ;;  %v3723_v63 = vpop.f32.mrf.mxu1 }
 0x217   :  { %3150 = vpow2.f32 %v1814_v0  ;;  %v1810_v9 = vmul.f32 1.442695, %v1774_v1  ;;  %v1777_v50 = vsub.f32 %v3672_v6, %v1601_v58  ;;  %v1587_v10 = vmax.f32 %v1585_v48, %v1586_v2 }
 0x218   :  { %v1620_v11 = vmax.f32 %v1618_v62, %v1619_v4  ;;  %v1605_v12 = vrot.slane %v1604_v7, 2  ;;  %v1625_v14 = vmax.f32 %v1623_v59, %v1624_v8  ;;  %v1610_v15 = vrot.slane %v1609_v56, 4 }
 0x219   :  { %v1816_v54 = vmul.f32 1.442695, %v1777_v50  ;;  %v1775_v17 = vsub.f32 %v3676_v13, %v1587_v10  ;;  %3152 = vpow2.f32 %v1810_v9  ;;  %v1644_v6 = vsel %vm1545_vm1, %v3699_v16, -inf  ;;  %v3733_v10 = vpop.f32.mrf.mxu1 }
 0x21a   :  { %v1621_v18 = vrot.slane %v1620_v11, 1  ;;  %v1606_v19 = vmax.f32 %v1604_v7, %v1605_v12  ;;  %v1626_v20 = vrot.slane %v1625_v14, 2  ;;  %v1611_v5 = vmax.f32 %v1609_v56, %v1610_v15 }
 0x21b   :  { %v3702_v21 = vpop.eup %3142  ;;  %3154 = vpow2.f32 %v1816_v54  ;;  %v1812_v23 = vmul.f32 1.442695, %v1775_v17  ;;  %v1645_v37 = vrot.slane %v1644_v6, 4 }
 0x21c   :  { %v1880_v22 = vsel %vm1545_vm1, %v3702_v21, 0.0  ;;  %v1622_v24 = vmax.f32 %v1620_v11, %v1621_v18  ;;  %v1627_v25 = vmax.f32 %v1625_v14, %v1626_v20  ;;  %v1607_v46 = vrot.slane %v1606_v19, 1 }
 0x21d   :  { %v3708_v30 = vpop.eup %3144  ;;  %v1881_v13 = vrot.slane %v1880_v22, 4  ;;  %v1612_v40 = vrot.slane %v1611_v5, 2  ;;  %3156 = vpow2.f32 %v1812_v23  ;;  %v1646_v52 = vmax.f32 %v1644_v6, %v1645_v37  ;;  %v3741_v6 = vpop.f32.mrf.mxu1 }
 0x21e   :  { %v1866_v36 = vsel %vm1545_vm1, %v3708_v30, 0.0  ;;  %v1780_v41 = vsub.f32 %v3680_v3, %v1622_v24  ;;  %v1628_v43 = vrot.slane %v1627_v25, 1  ;;  %v1608_v51 = vmax.f32 %v1606_v19, %v1607_v46 }
 0x21f   :  { %v3712_v39 = vpop.eup %3146  ;;  %v1882_v47 = vadd.f32 %v1881_v13, %v1880_v22  ;;  %v1867_v49 = vrot.slane %v1866_v36, 4  ;;  %v1613_v55 = vmax.f32 %v1611_v5, %v1612_v40  ;;  %v1647_v58 = vrot.slane %v1646_v52, 2 }
 0x220   :  { %v1887_v38 = vsel %vm1545_vm1, %v3712_v39, 0.0  ;;  %v1822_v48 = vmul.f32 1.442695, %v1780_v41  ;;  %v1629_v62 = vmax.f32 %v1627_v25, %v1628_v43  ;;  %v1778_v0 = vsub.f32 %v3682_v35, %v1608_v51 }
 0x221   :  { %v3717_v45 = vpop.eup %3148  ;;  %v1888_v53 = vrot.slane %v1887_v38, 4  ;;  %v1883_v3 = vrot.slane %v1882_v47, 2  ;;  %v1868_v59 = vadd.f32 %v1867_v49, %v1866_v36  ;;  %v1614_v7 = vrot.slane %v1613_v55, 1  ;;  %v3750_v49 = vpop.f32.mrf.mxu1 }
 0x222   :  { %v1873_v42 = vsel %vm1545_vm1, %v3717_v45, 0.0  ;;  %3158 = vpow2.f32 %v1822_v48  ;;  %v1781_v50 = vsub.f32 %v3686_v44, %v1629_v62  ;;  %v1818_v35 = vmul.f32 1.442695, %v1778_v0 }
 0x223   :  { %v1874_v60 = vrot.slane %v1873_v42, 4  ;;  %v1889_v4 = vadd.f32 %v1888_v53, %v1887_v38  ;;  %v1884_v11 = vadd.f32 %v1883_v3, %v1882_v47  ;;  %v1869_v12 = vrot.slane %v1868_v59, 2 }
 0x224   :  { %v3721_v57 = vpop.eup %3150  ;;  %v1648_v15 = vmax.f32 %v1646_v52, %v1647_v58  ;;  %v1615_v18 = vmax.f32 %v1613_v55, %v1614_v7  ;;  %v1630_v19 = vsel %vm1545_vm1, %v3723_v63, -inf  ;;  %v1824_v44 = vmul.f32 1.442695, %v1781_v50  ;;  %v3752_v58 = vpop.f32.mrf.mxu1 }
 0x225   :  { %v1908_v1 = vsel %vm1545_vm1, %v3721_v57, 0.0  ;;  %v1875_v56 = vadd.f32 %v1874_v60, %v1873_v42  ;;  %v1890_v54 = vrot.slane %v1889_v4, 2  ;;  %v1885_v23 = vrot.slane %v1884_v11, 1 }
 0x226   :  { %v3728_v2 = vpop.eup %3152  ;;  %v1909_v9 = vrot.slane %v1908_v1, 4  ;;  %v1870_v24 = vadd.f32 %v1869_v12, %v1868_v59  ;;  %3160 = vpow2.f32 %v1818_v35  ;;  %v1649_v46 = vrot.slane %v1648_v15, 1 }
 0x227   :  { %v1894_v14 = vsel %vm1545_vm1, %v3728_v2, 0.0  ;;  %v1876_v20 = vrot.slane %v1875_v56, 2  ;;  %v1631_v36 = vrot.slane %v1630_v19, 4  ;;  %v1891_v37 = vadd.f32 %v1890_v54, %v1889_v4 }
 0x228   :  { %v3730_v8 = vpop.eup %3154  ;;  %v1910_v5 = vadd.f32 %v1909_v9, %v1908_v1  ;;  %v1895_v25 = vrot.slane %v1894_v14, 4  ;;  %v1779_v40 = vsub.f32 %v3691_v61, %v1615_v18  ;;  %v1651_v38 = vsel %vm1545_vm1, %v3733_v10, -inf }
 0x229   :  { %v1915_v17 = vsel %vm1545_vm1, %v3730_v8, 0.0  ;;  %v1877_v41 = vadd.f32 %v1876_v20, %v1875_v56  ;;  %3162 = vpow2.f32 %v1824_v44  ;;  %v1886_v51 = vadd.f32 %v1885_v23, %v1884_v11 }
 0x22a   :  { %v3743_v22 = vpop.eup %3156  ;;  %v1916_v13 = vrot.slane %v1915_v17, 4  ;;  %v1911_v43 = vrot.slane %v1910_v5, 2  ;;  %v1871_v42 = vrot.slane %v1870_v24, 1  ;;  %v1896_v52 = vadd.f32 %v1895_v25, %v1894_v14 }
 0x22b   :  { %v1901_v47 = vsel %vm1545_vm1, %v3743_v22, 0.0  ;;  %v1632_v53 = vmax.f32 %v1630_v19, %v1631_v36  ;;  %v1650_v60 = vmax.f32 %v1648_v15, %v1649_v46  ;;  %v1652_v48 = vrot.slane %v1651_v38, 4  ;;  %v3759_v19 = vpop.f32.mrf.mxu1 }
 0x22c   :  { %v1917_v55 = vadd.f32 %v1916_v13, %v1915_v17  ;;  %v1892_v62 = vrot.slane %v1891_v37, 1  ;;  %v1902_v61 = vrot.slane %v1901_v47, 4  ;;  %v1820_v3 = vmul.f32 1.442695, %v1779_v40 }
 0x22d   :  { %v1878_v59 = vrot.slane %v1877_v41, 1  ;;  %v1912_v0 = vadd.f32 %v1911_v43, %v1910_v5  ;;  %v1633_v1 = vrot.slane %v1632_v53, 2  ;;  %3164 = vrcp.f32 %v1886_v51 }
 0x22e   :  { %v1872_v7 = vadd.f32 %v1871_v42, %v1870_v24  ;;  %v1897_v56 = vrot.slane %v1896_v52, 2  ;;  %v1918_v9 = vrot.slane %v1917_v55, 2  ;;  %v1784_v50 = vsub.f32 %v3699_v16, %v1650_v60 }
 0x22f   :  { %v3754_v4 = vpop.eup %3158  ;;  %v1634_v11 = vmax.f32 %v1632_v53, %v1633_v1  ;;  %v1653_v12 = vmax.f32 %v1651_v38, %v1652_v48  ;;  %v1893_v35 = vadd.f32 %v1892_v62, %v1891_v37  ;;  %v1903_v14 = vadd.f32 %v1902_v61, %v1901_v47 }
 0x230   :  { %4228 = vst [vmem:[#allocation27_spill] sm:$0xff] %v3754_v4  ;;  %3166 = vpow2.f32 %v1820_v3  ;;  %v1879_v15 = vadd.f32 %v1878_v59, %v1877_v41  ;;  %v1913_v54 = vrot.slane %v1912_v0, 1  ;;  %v1936_v17 = vsel %vm1545_vm1, %v3754_v4, 0.0  ;;  %v3766_v41 = vpop.f32.mrf.mxu1 }
 0x231   :  { %v1635_v18 = vrot.slane %v1634_v11, 1  ;;  %3168 = vrcp.f32 %v1872_v7  ;;  %v1898_v20 = vadd.f32 %v1897_v56, %v1896_v52  ;;  %v1654_v5 = vrot.slane %v1653_v12, 2 }
 0x232   :  { %v1919_v23 = vadd.f32 %v1918_v9, %v1917_v55  ;;  %v1830_v16 = vmul.f32 1.442695, %v1784_v50  ;;  %v1637_v25 = vsel %vm1545_vm1, %v3741_v6, -inf  ;;  %3170 = vrcp.f32 %v1893_v35 }
 0x233   :  { %v3761_v44 = vpop.eup %3160  ;;  %v1636_v24 = vmax.f32 %v1634_v11, %v1635_v18  ;;  %v1904_v13 = vrot.slane %v1903_v14, 2  ;;  %v1937_v46 = vrot.slane %v1936_v17, 4  ;;  %v1655_v36 = vmax.f32 %v1653_v12, %v1654_v5 }
 0x234   :  { %3172 = vrcp.f32 %v1879_v15  ;;  %v1914_v37 = vadd.f32 %v1913_v54, %v1912_v0  ;;  %v1638_v38 = vrot.slane %v1637_v25, 4  ;;  %v1899_v47 = vrot.slane %v1898_v20, 1  ;;  %v3780_v0 = vpop.f32.mrf.mxu1 }
 0x235   :  { %v1782_v40 = vsub.f32 %v3723_v63, %v1636_v24  ;;  %v1922_v51 = vsel %vm1545_vm1, %v3761_v44, 0.0  ;;  %v1656_v42 = vrot.slane %v1655_v36, 1  ;;  %v1672_v52 = vsel %vm1545_vm1, %v3750_v49, -inf }
 0x236   :  { %v3768_v43 = vpop.eup %3162  ;;  %v1920_v53 = vrot.slane %v1919_v23, 1  ;;  %3174 = vpow2.f32 %v1830_v16  ;;  %v3774_v60 = vadd.f32 %v1904_v13, %v1903_v14  ;;  %v3776_v48 = vadd.f32 %v1937_v46, %v1936_v17  ;;  %v3795_v24 = vpop.f32.mrf.mxu1 }
 0x237   :  { %v1826_v55 = vmul.f32 1.442695, %v1782_v40  ;;  %v1657_v63 = vmax.f32 %v1655_v36, %v1656_v42  ;;  %v1639_v62 = vmax.f32 %v1637_v25, %v1638_v38  ;;  %3176 = vrcp.f32 %v1914_v37 }
 0x238   :  { %v1923_v61 = vrot.slane %v1922_v51, 4  ;;  %v1673_v3 = vrot.slane %v1672_v52, 4  ;;  %v1658_v59 = vsel %vm1545_vm1, %v3752_v58, -inf  ;;  %v1900_v1 = vadd.f32 %v1899_v47, %v1898_v20 }
 0x239   :  { %v3784_v7 = vsel %vm1545_vm1, %v3768_v43, 0.0  ;;  %3178 = vpow2.f32 %v1826_v55  ;;  %v1785_v56 = vsub.f32 %v3733_v10, %v1657_v63  ;;  %v1921_v50 = vadd.f32 %v1920_v53, %v1919_v23 }
 0x23a   :  { %v3787_v9 = vpop.eup %3164  ;;  %v1640_v11 = vrot.slane %v1639_v62, 2  ;;  %v1674_v12 = vmax.f32 %v1672_v52, %v1673_v3  ;;  %v1659_v35 = vrot.slane %v1658_v59, 4  ;;  %v1906_v14 = vrot.slane %v3774_v60, 1 }
 0x23b   :  { %v1939_v15 = vrot.slane %v3776_v48, 2  ;;  %v1832_v54 = vmul.f32 1.442695, %v1785_v56  ;;  %v1679_v17 = vsel %vm1545_vm1, %v3759_v19, -inf  ;;  %3180 = vrcp.f32 %v1900_v1 }
 0x23c   :  { %v1641_v20 = vmax.f32 %v1639_v62, %v1640_v11  ;;  %v1675_v5 = vrot.slane %v1674_v12, 2  ;;  %v1660_v16 = vmax.f32 %v1658_v59, %v1659_v35  ;;  %v1680_v10 = vrot.slane %v1679_v17, 4 }
 0x23d   :  { %v3793_v18 = vpop.eup %3166  ;;  %v3797_v23 = vadd.f32 %v1923_v61, %v1922_v51  ;;  %v1665_v25 = vsel %vm1545_vm1, %v3766_v41, -inf  ;;  %v1700_v13 = vsel %vm1545_vm1, %v3780_v0, -inf  ;;  %3182 = vpow2.f32 %v1832_v54  ;;  %v3810_v61 = vpop.f32.mrf.mxu1 }
 0x23e   :  { %v3803_v46 = vpop.eup %3168  ;;  %v1642_v36 = vrot.slane %v1641_v20, 1  ;;  %v1676_v37 = vmax.f32 %v1674_v12, %v1675_v5  ;;  %v1661_v40 = vrot.slane %v1660_v16, 2  ;;  %v1944_v38 = vrot.slane %v3784_v7, 4 }
 0x23f   :  { %v1681_v47 = vmax.f32 %v1679_v17, %v1680_v10  ;;  %v1666_v42 = vrot.slane %v1665_v25, 4  ;;  %v1701_v52 = vrot.slane %v1700_v13, 4  ;;  %v3806_v53 = vpop.eup %3170  ;;  %v1686_v62 = vsel %vm1545_vm1, %v3795_v24, -inf }
 0x240   :  { %v1643_v51 = vmax.f32 %v1641_v20, %v1642_v36  ;;  %v1677_v55 = vrot.slane %v1676_v37, 1  ;;  %v1662_v63 = vmax.f32 %v1660_v16, %v1661_v40  ;;  %3184 = vrcp.f32 %v1921_v50 }
 0x241   :  { %v3812_v3 = vpop.eup %3172  ;;  %v1682_v59 = vrot.slane %v1681_v47, 2  ;;  %v1667_v1 = vmax.f32 %v1665_v25, %v1666_v42  ;;  %v1702_v56 = vmax.f32 %v1700_v13, %v1701_v52  ;;  %v1687_v54 = vrot.slane %v1686_v62, 4  ;;  %v3820_v25 = vpop.f32.mrf.mxu1 }
 0x242   :  { %v1783_v11 = vsub.f32 %v3741_v6, %v1643_v51  ;;  %v1678_v12 = vmax.f32 %v1676_v37, %v1677_v55  ;;  %v1663_v35 = vrot.slane %v1662_v63, 1  ;;  %v1929_v20 = vsel %vm1545_vm1, %v3793_v18, 0.0 }
 0x243   :  { %v3815_v17 = vpop.eup %3174  ;;  %v1683_v5 = vmax.f32 %v1681_v47, %v1682_v59  ;;  %v1668_v16 = vrot.slane %v1667_v1, 2  ;;  %v1703_v10 = vrot.slane %v1702_v56, 2  ;;  %v1688_v34 = vmax.f32 %v1686_v62, %v1687_v54  ;;  %v3838_v54 = vpop.f32.mrf.mxu1 }
 0x244   :  { %4229 = vst [vmem:[#allocation28_spill] sm:$0xff] %v3815_v17  ;;  %v1828_v36 = vmul.f32 1.442695, %v1783_v11  ;;  %v1788_v40 = vsub.f32 %v3750_v49, %v1678_v12  ;;  %v1664_v50 = vmax.f32 %v1662_v63, %v1663_v35  ;;  %v3822_v13 = vpop.eup %3176  ;;  %v1707_v52 = vsel %vm1545_vm1, %v3810_v61, -inf }
 0x245   :  { %v1684_v6 = vrot.slane %v1683_v5, 1  ;;  %v1669_v37 = vmax.f32 %v1667_v1, %v1668_v16  ;;  %v1704_v42 = vmax.f32 %v1702_v56, %v1703_v10  ;;  %v1689_v59 = vrot.slane %v1688_v34, 2 }
 0x246   :  { %v3826_v51 = vpop.eup %3178  ;;  %3186 = vpow2.f32 %v1828_v36  ;;  %v1838_v47 = vmul.f32 1.442695, %v1788_v40  ;;  %v1786_v55 = vsub.f32 %v3752_v58, %v1664_v50  ;;  %v1907_v49 = vadd.f32 %v1906_v14, %v3774_v60 }
 0x247   :  { %v3831_v63 = vadd.f32 %v1939_v15, %v3776_v48  ;;  %v1685_v62 = vmax.f32 %v1683_v5, %v1684_v6  ;;  %v1670_v11 = vrot.slane %v1669_v37, 1  ;;  %v1945_v1 = vadd.f32 %v1944_v38, %v3784_v7 }
 0x248   :  { %v1930_v56 = vrot.slane %v1929_v20, 4  ;;  %v1964_v12 = vsel %vm1545_vm1, %v3815_v17, 0.0  ;;  %v1950_v35 = vsel %vm1545_vm1, %v3826_v51, 0.0  ;;  %3188 = vpow2.f32 %v1838_v47  ;;  %v3840_v14 = vpop.eup %3180 }
 0x249   :  { %v1671_v58 = vmax.f32 %v1669_v37, %v1670_v11  ;;  %v1705_v16 = vrot.slane %v1704_v42, 1  ;;  %v1708_v60 = vrot.slane %v1707_v52, 4  ;;  %v1925_v48 = vrot.slane %v3797_v23, 2  ;;  %v3849_v11 = vpop.f32.mrf.mxu1 }
 0x24a   :  { %v1834_v15 = vmul.f32 1.442695, %v1786_v55  ;;  %v1690_v5 = vmax.f32 %v1688_v34, %v1689_v59  ;;  %v1693_v7 = vsel %vm1545_vm1, %v3820_v25, -inf  ;;  %v3845_v38 = vpop.eup %3182  ;;  %3190 = vrcp.f32 %v1907_v49 }
 0x24b   :  { %4230 = vst [vmem:[#allocation29_spill] sm:$0xff] %v3845_v38  ;;  %v1965_v10 = vrot.slane %v1964_v12, 4  ;;  %v1789_v36 = vsub.f32 %v3759_v19, %v1685_v62  ;;  %v1709_v40 = vmax.f32 %v1707_v52, %v1708_v60  ;;  %v1931_v50 = vadd.f32 %v1930_v56, %v1929_v20 }
 0x24c   :  { %v1951_v6 = vrot.slane %v1950_v35, 4  ;;  %v1787_v37 = vsub.f32 %v3766_v41, %v1671_v58  ;;  %v1694_v47 = vrot.slane %v1693_v7, 4  ;;  %v1941_v55 = vrot.slane %v3831_v63, 1 }
 0x24d   :  { %v1946_v34 = vrot.slane %v1945_v1, 2  ;;  %v1971_v59 = vsel %vm1545_vm1, %v3845_v38, 0.0  ;;  %v1706_v33 = vmax.f32 %v1704_v42, %v1705_v16  ;;  %v3854_v32 = vpop.eup %3184  ;;  %3192 = vpow2.f32 %v1834_v15 }
 0x24e   :  { %v1691_v49 = vrot.slane %v1690_v5, 1  ;;  %v1710_v19 = vrot.slane %v1709_v40, 2  ;;  %v1695_v52 = vmax.f32 %v1693_v7, %v1694_v47  ;;  %v1966_v20 = vadd.f32 %v1965_v10, %v1964_v12 }
 0x24f   :  { %v1840_v62 = vmul.f32 1.442695, %v1789_v36  ;;  %v1728_v41 = vsel %vm1545_vm1, %v3838_v54, -inf  ;;  %v1714_v56 = vsel %vm1545_vm1, %v3849_v11, -inf  ;;  %v1932_v58 = vrot.slane %v1931_v50, 2 }
 0x250   :  { %v1952_v60 = vadd.f32 %v1951_v6, %v1950_v35  ;;  %v1972_v31 = vrot.slane %v1971_v59, 4  ;;  %v1836_v29 = vmul.f32 1.442695, %v1787_v37  ;;  %v1711_v28 = vmax.f32 %v1709_v40, %v1710_v19 }
 0x251   :  { %v1696_v42 = vrot.slane %v1695_v52, 2  ;;  %v1729_v16 = vrot.slane %v1728_v41, 4  ;;  %v1715_v27 = vrot.slane %v1714_v56, 4  ;;  %v1926_v15 = vadd.f32 %v1925_v48, %v3797_v23 }
 0x252   :  { %v1947_v26 = vadd.f32 %v1946_v34, %v1945_v1  ;;  %v1792_v12 = vsub.f32 %v3780_v0, %v1706_v33  ;;  %v1692_v7 = vmax.f32 %v1690_v5, %v1691_v49  ;;  %v1967_v36 = vrot.slane %v1966_v20, 2  ;;  %v3870_v49 = vpop.f32.mrf.mxu1 }
 0x253   :  { %v3862_v10 = vpop.eup %3186  ;;  %3194 = vpow2.f32 %v1840_v62  ;;  %v1697_v47 = vmax.f32 %v1695_v52, %v1696_v42  ;;  %v1716_v17 = vmax.f32 %v1714_v56, %v1715_v27  ;;  %v1973_v38 = vadd.f32 %v1972_v31, %v1971_v59 }
 0x254   :  { %v1957_v35 = vsel %vm1545_vm1, %v3862_v10, 0.0  ;;  %3196 = vpow2.f32 %v1836_v29  ;;  %v1730_v40 = vmax.f32 %v1728_v41, %v1729_v16  ;;  %v1933_v6 = vadd.f32 %v1932_v58, %v1931_v50 }
 0x255   :  { %v1953_v37 = vrot.slane %v1952_v60, 2  ;;  %v1712_v19 = vrot.slane %v1711_v28, 1  ;;  %v1698_v23 = vrot.slane %v1697_v47, 1  ;;  %v3866_v1 = vpop.eup %3188  ;;  %v1942_v33 = vadd.f32 %v1941_v55, %v3831_v63 }
 0x256   :  { %4231 = vst [vmem:[#allocation30_spill] sm:$0xff] %v3866_v1  ;;  %v1846_v0 = vmul.f32 1.442695, %v1792_v12  ;;  %v1790_v48 = vsub.f32 %v3795_v24, %v1692_v7  ;;  %v1717_v5 = vrot.slane %v1716_v17, 2  ;;  %v1927_v34 = vrot.slane %v1926_v15, 1 }
 0x257   :  { %v1968_v27 = vadd.f32 %v1967_v36, %v1966_v20  ;;  %v1958_v31 = vrot.slane %v1957_v35, 4  ;;  %v1699_v59 = vmax.f32 %v1697_v47, %v1698_v23  ;;  %v3872_v29 = vpop.eup %3190  ;;  %v1948_v50 = vrot.slane %v1947_v26, 1 }
 0x258   :  { %v1974_v52 = vrot.slane %v1973_v38, 2  ;;  %v1731_v62 = vrot.slane %v1730_v40, 2  ;;  %v1718_v41 = vmax.f32 %v1716_v17, %v1717_v5  ;;  %v1934_v56 = vrot.slane %v1933_v6, 1 }
 0x259   :  { %v1954_v58 = vadd.f32 %v1953_v37, %v1952_v60  ;;  %v1992_v63 = vsel %vm1545_vm1, %v3866_v1, 0.0  ;;  %v1713_v55 = vmax.f32 %v1711_v28, %v1712_v19  ;;  %3198 = vpow2.f32 %v1846_v0 }
 0x25a   :  { %v1842_v24 = vmul.f32 1.442695, %v1790_v48  ;;  %v1791_v20 = vsub.f32 %v3820_v25, %v1699_v59  ;;  %v1735_v42 = vsel %vm1545_vm1, %v3870_v49, -inf  ;;  %v3879_v16 = vpop.eup %3192  ;;  %v1928_v12 = vadd.f32 %v1927_v34, %v1926_v15  ;;  %v3884_v59 = vpop.f32.mrf.mxu1 }
 0x25b   :  { %4232 = vst [vmem:[#allocation31_spill] sm:$0xff] %v3879_v16  ;;  %v1969_v7 = vrot.slane %v1968_v27, 1  ;;  %v1959_v36 = vadd.f32 %v1958_v31, %v1957_v35  ;;  %v1719_v47 = vrot.slane %v1718_v41, 1  ;;  %v1975_v17 = vadd.f32 %v1974_v52, %v1973_v38 }
 0x25c   :  { %v1993_v23 = vrot.slane %v1992_v63, 4  ;;  %v1844_v60 = vmul.f32 1.442695, %v1791_v20  ;;  %v1732_v37 = vmax.f32 %v1730_v40, %v1731_v62  ;;  %3200 = vrcp.f32 %v1942_v33  ;;  %v3890_v62 = vpop.f32.mrf.mxu1 }
 0x25d   :  { %v1949_v5 = vadd.f32 %v1948_v50, %v1947_v26  ;;  %v1793_v28 = vsub.f32 %v3810_v61, %v1713_v55  ;;  %v1736_v19 = vrot.slane %v1735_v42, 4  ;;  %v1935_v0 = vadd.f32 %v1934_v56, %v1933_v6 }
 0x25e   :  { %v1955_v25 = vrot.slane %v1954_v58, 1  ;;  %v1978_v48 = vsel %vm1545_vm1, %v3879_v16, 0.0  ;;  %3202 = vpow2.f32 %v1842_v24  ;;  %v1970_v15 = vadd.f32 %v1969_v7, %v1968_v27 }
 0x25f   :  { %v1960_v35 = vrot.slane %v1959_v36, 2  ;;  %3204 = vpow2.f32 %v1844_v60  ;;  %v1720_v38 = vmax.f32 %v1718_v41, %v1719_v47  ;;  %v1976_v40 = vrot.slane %v1975_v17, 1 }
 0x260   :  { %v3886_v34 = vpop.eup %3194  ;;  %3206 = vrcp.f32 %v1928_v12  ;;  %v1994_v26 = vadd.f32 %v1993_v23, %v1992_v63  ;;  %v1733_v33 = vrot.slane %v1732_v37, 1  ;;  %v1979_v6 = vrot.slane %v1978_v48, 4 }
 0x261   :  { %4233 = vst [vmem:[#allocation32_spill] sm:$0xff] %v3886_v34  ;;  %v3888_v61 = vpop.eup %3196  ;;  %3208 = vrcp.f32 %v1949_v5  ;;  %v1848_v31 = vmul.f32 1.442695, %v1793_v28  ;;  %v1737_v50 = vmax.f32 %v1735_v42, %v1736_v19  ;;  %v1956_v52 = vadd.f32 %v1955_v25, %v1954_v58 }
 0x262   :  { %4234 = vst [vmem:[#allocation33_spill] sm:$0xff] %v3888_v61  ;;  %3210 = vrcp.f32 %v1935_v0  ;;  %v1961_v27 = vadd.f32 %v1960_v35, %v1959_v36  ;;  %v1999_v41 = vsel %vm1545_vm1, %v3886_v34, 0.0  ;;  %v1794_v56 = vsub.f32 %v3849_v11, %v1720_v38  ;;  %v3903_v11 = vpop.f32.mrf.mxu1 }
 0x263   :  { %3212 = vrcp.f32 %v1970_v15  ;;  %v1977_v55 = vadd.f32 %v1976_v40, %v1975_v17  ;;  %v1995_v63 = vrot.slane %v1994_v26, 2  ;;  %v1985_v24 = vsel %vm1545_vm1, %v3888_v61, 0.0 }
 0x264   :  { %v1734_v20 = vmax.f32 %v1732_v37, %v1733_v33  ;;  %v1980_v12 = vadd.f32 %v1979_v6, %v1978_v48  ;;  %3214 = vpow2.f32 %v1848_v31  ;;  %v1850_v42 = vmul.f32 1.442695, %v1794_v56 }
 0x265   :  { %v1738_v7 = vrot.slane %v1737_v50, 2  ;;  %v3899_v58 = vmul.f32 %v3787_v9, %v3702_v21  ;;  %3216 = vrcp.f32 %v1956_v52  ;;  %v2000_v36 = vrot.slane %v1999_v41, 4 }
 0x266   :  { %v1721_v47 = vsel %vm1545_vm1, %v3884_v59, -inf  ;;  %v3905_v17 = vpop.eup %3198  ;;  %v1962_v23 = vrot.slane %v1961_v27, 1  ;;  %v1986_v60 = vrot.slane %v1985_v24, 4  ;;  %v3909_v28 = vmul.f32 %v3806_v53, %v3712_v39  ;;  %v3922_v53 = vpop.f32.mrf.mxu1 }
 0x267   :  { %4235 = vst [vmem:[#allocation34_spill] sm:$0xff] %v3905_v17  ;;  %v1739_v37 = vmax.f32 %v1737_v50, %v1738_v7  ;;  %v1722_v5 = vrot.slane %v1721_v47, 4  ;;  %3218 = vrcp.f32 %v1977_v55  ;;  %v3911_v21 = vadd.f32 %v1995_v63, %v1994_v26 }
 0x268   :  { %v1796_v9 = vsub.f32 %v3838_v54, %v1734_v20  ;;  %v1981_v19 = vrot.slane %v1980_v12, 2  ;;  %3220 = vpow2.f32 %v1850_v42  ;;  %v2001_v15 = vadd.f32 %v2000_v36, %v1999_v41 }
 0x269   :  { %v1740_v0 = vrot.slane %v1739_v37, 1  ;;  %v1723_v25 = vmax.f32 %v1721_v47, %v1722_v5  ;;  %v3914_v48 = vpop.eup %3200  ;;  %v2020_v35 = vsel %vm1545_vm1, %v3905_v17, 0.0  ;;  %v1756_v38 = vsel %vm1545_vm1, %v3890_v62, -inf }
 0x26a   :  { %4236 = vst [vmem:[#allocation35_spill] sm:$0xff] %v3914_v48  ;;  %v1742_v39 = vsel %vm1545_vm1, %v3903_v11, -inf  ;;  %v1963_v54 = vadd.f32 %v1962_v23, %v1961_v27  ;;  %v1987_v26 = vadd.f32 %v1986_v60, %v1985_v24  ;;  %v1854_v52 = vmul.f32 1.442695, %v1796_v9  ;;  %v3938_v60 = vpop.f32.mrf.mxu1 }
 0x26b   :  { %v3924_v40 = vpop.eup %3202  ;;  %v1741_v33 = vmax.f32 %v1739_v37, %v1740_v0  ;;  %v1724_v6 = vrot.slane %v1723_v25, 2  ;;  %v1757_v41 = vrot.slane %v1756_v38, 4  ;;  %v1743_v56 = vrot.slane %v1742_v39, 4 }
 0x26c   :  { %4237 = vst [vmem:[#allocation36_spill] sm:$0xff] %v3924_v40  ;;  %v3926_v31 = vpop.eup %3204  ;;  %v1982_v63 = vadd.f32 %v1981_v19, %v1980_v12  ;;  %v2021_v20 = vrot.slane %v2020_v35, 4  ;;  %v2006_v27 = vsel %vm1545_vm1, %v3924_v40, 0.0  ;;  %v1763_v23 = vsel %vm1545_vm1, %v3922_v53, -inf }
 0x26d   :  { %4238 = vst [vmem:[#allocation37_spill] sm:$0xff] %v3926_v31  ;;  %v3929_v55 = vpop.eup %3206  ;;  %v1797_v42 = vsub.f32 %v3870_v49, %v1741_v33  ;;  %v1725_v7 = vmax.f32 %v1723_v25, %v1724_v6  ;;  %v1758_v24 = vmax.f32 %v1756_v38, %v1757_v41  ;;  %v1744_v47 = vmax.f32 %v1742_v39, %v1743_v56 }
 0x26e   :  { %v3932_v36 = vpop.eup %3208  ;;  %v1988_v5 = vrot.slane %v1987_v26, 2  ;;  %v2013_v12 = vsel %vm1545_vm1, %v3926_v31, 0.0  ;;  %3222 = vpow2.f32 %v1854_v52  ;;  %v1764_v38 = vrot.slane %v1763_v23, 4 }
 0x26f   :  { %v3940_v37 = vpop.eup %3210  ;;  %v1856_v49 = vmul.f32 1.442695, %v1797_v42  ;;  %v1726_v9 = vrot.slane %v1725_v7, 1  ;;  %v1759_v0 = vrot.slane %v1758_v24, 2  ;;  %v1745_v25 = vrot.slane %v1744_v47, 2 }
 0x270   :  { %v3944_v19 = vpop.eup %3212  ;;  %v2002_v39 = vrot.slane %v2001_v15, 2  ;;  %v1749_v6 = vsel %vm1545_vm1, %v3938_v60, -inf  ;;  %v2014_v56 = vrot.slane %v2013_v12, 4  ;;  %v1765_v1 = vmax.f32 %v1763_v23, %v1764_v38 }
 0x271   :  { %4239 = vst [vmem:[#allocation38_spill] sm:$0xff] %v3944_v19  ;;  %3224 = vpow2.f32 %v1856_v49  ;;  %v1727_v33 = vmax.f32 %v1725_v7, %v1726_v9  ;;  %v3948_v41 = vpop.eup %3214  ;;  %v1760_v50 = vmax.f32 %v1758_v24, %v1759_v0  ;;  %v1746_v17 = vmax.f32 %v1744_v47, %v1745_v25 }
 0x272   :  { %4240 = vst [vmem:[#allocation39_spill] sm:$0xff] %v3948_v41  ;;  %v3950_v42 = vpop.eup %3216  ;;  %v1983_v40 = vrot.slane %v1982_v63, 1  ;;  %v1989_v34 = vadd.f32 %v1988_v5, %v1987_v26  ;;  %v2007_v52 = vrot.slane %v2006_v27, 4  ;;  %v1766_v49 = vrot.slane %v1765_v1, 2 }
 0x273   :  { %v1795_v31 = vsub.f32 %v3884_v59, %v1727_v33  ;;  %v1761_v19 = vrot.slane %v1760_v50, 1  ;;  %v1747_v16 = vrot.slane %v1746_v17, 1  ;;  %v1750_v7 = vrot.slane %v1749_v6, 4 }
 0x274   :  { %v3953_v9 = vpop.eup %3218  ;;  %3226 = vrcp.f32 %v1963_v54  ;;  %v3955_v61 = vadd.f32 %v2002_v39, %v2001_v15  ;;  %v3957_v48 = vadd.f32 %v2021_v20, %v2020_v35  ;;  %v2027_v24 = vsel %vm1545_vm1, %v3948_v41, 0.0 }
 0x275   :  { %v3961_v47 = vpop.eup %3220  ;;  %v2015_v26 = vadd.f32 %v2014_v56, %v2013_v12  ;;  %v1852_v23 = vmul.f32 1.442695, %v1795_v31  ;;  %v1762_v5 = vmax.f32 %v1760_v50, %v1761_v19  ;;  %v1748_v59 = vmax.f32 %v1746_v17, %v1747_v16 }
 0x276   :  { %v1984_v0 = vadd.f32 %v1983_v40, %v1982_v63  ;;  %v2008_v25 = vadd.f32 %v2007_v52, %v2006_v27  ;;  %v1767_v38 = vmax.f32 %v1765_v1, %v1766_v49  ;;  %v1751_v33 = vmax.f32 %v1749_v6, %v1750_v7 }
 0x277   :  { %v1990_v4 = vrot.slane %v1989_v34, 1  ;;  %3228 = vpow2.f32 %v1852_v23  ;;  %v1800_v15 = vsub.f32 %v3890_v62, %v1762_v5  ;;  %v1798_v35 = vsub.f32 %v3903_v11, %v1748_v59 }
 0x278   :  { %v2028_v54 = vrot.slane %v2027_v24, 4  ;;  %v2034_v20 = vsel %vm1545_vm1, %v3961_v47, 0.0  ;;  %v1768_v39 = vrot.slane %v1767_v38, 1  ;;  %v1752_v41 = vrot.slane %v1751_v33, 2 }
 0x279   :  { %v2023_v31 = vrot.slane %v3957_v48, 2  ;;  %v2016_v50 = vrot.slane %v2015_v26, 2  ;;  %v1862_v16 = vmul.f32 1.442695, %v1800_v15  ;;  %v1858_v17 = vmul.f32 1.442695, %v1798_v35 }
 0x27a   :  { %v2009_v40 = vrot.slane %v2008_v25, 2  ;;  %v1769_v1 = vmax.f32 %v1767_v38, %v1768_v39  ;;  %v1753_v63 = vmax.f32 %v1751_v33, %v1752_v41  ;;  %v2123_v27 = vmul.f32 %v3812_v3, %v3717_v45 }
 0x27b   :  { %v1991_v62 = vadd.f32 %v1990_v4, %v1989_v34  ;;  %v2035_v12 = vrot.slane %v2034_v20, 4  ;;  %3230 = vpow2.f32 %v1862_v16  ;;  %v2122_v11 = vmul.f32 %v3803_v46, %v3708_v30  ;;  %v3972_v19 = vpop.eup %3222 }
 0x27c   :  { %v2029_v6 = vadd.f32 %v2028_v54, %v2027_v24  ;;  %3232 = vpow2.f32 %v1858_v17  ;;  %v1801_v56 = vsub.f32 %v3922_v53, %v1769_v1  ;;  %v1754_v52 = vrot.slane %v1753_v63, 1 }
 0x27d   :  { %v2017_v7 = vadd.f32 %v2016_v50, %v2015_v26  ;;  %v2154_v41 = vpack.c.bf16 %v2123_v27, %v2122_v11  ;;  %v2126_v45 = vmul.f32 %v3840_v14, %v3728_v2  ;;  %v2127_v4 = vmul.f32 %v3872_v29, %v3743_v22 }
 0x27e   :  { %v3975_v49 = vpop.eup %3224  ;;  %v2010_v3 = vadd.f32 %v2009_v40, %v2008_v25  ;;  %v1864_v34 = vmul.f32 1.442695, %v1801_v56  ;;  %v1755_v30 = vmax.f32 %v1753_v63, %v1754_v52  ;;  %v2155_v46 = vpack.c.bf16 %v3909_v28, %v3899_v58 }
 0x27f   :  { %3234 = vrcp.f32 %v1991_v62  ;;  %v2036_v24 = vadd.f32 %v2035_v12, %v2034_v20  ;;  %v2055_v53 = vsel %vm1545_vm1, %v3975_v49, 0.0  ;;  %3023 = vmatprep.mubr.msk.bf16.mxu0 %vm1545_vm1, %v2154_v41  ;;  %v2156_v26 = vpack.c.bf16 %v2127_v4, %v2126_v45 }
 0x280   :  { %v4241_v2 = vrot.slane %v3911_v21, 1  ;;  %v2004_v22 = vrot.slane %v3955_v61, 1  ;;  %3236 = vpow2.f32 %v1864_v34  ;;  %v1799_v29 = vsub.f32 %v3938_v60, %v1755_v30  ;;  %3024 = vmatmul.mubr.msk.bf16.vlgmr.msra.gmra.mxu0 %vm1545_vm1, %v2155_v46 }
 0x281   :  { %v3227_v58 = vpop.eup %3226  ;;  %v2030_v28 = vrot.slane %v2029_v6, 2  ;;  %v2018_v23 = vrot.slane %v2017_v7, 1  ;;  %v2048_v5 = vsel %vm1545_vm1, %v3972_v19, 0.0  ;;  %3027 = vmatprep.mubr.msk.bf16.mxu0 %vm1545_vm1, %v2156_v26  ;;  %v2131_v59 = vmul.f32 %v3940_v37, %v3793_v18 }
 0x282   :  { %v1998_v14 = vadd.f32 %v4241_v2, %v3911_v21  ;;  %3238 = vrcp.f32 %v1984_v0  ;;  %v2056_v21 = vrot.slane %v2055_v53, 4  ;;  %v1860_v25 = vmul.f32 1.442695, %v1799_v29 }
 0x283   :  { %v2129_v38 = vmul.f32 %v3854_v32, %v3730_v8  ;;  %v2024_v60 = vadd.f32 %v2023_v31, %v3957_v48  ;;  %v2011_v33 = vrot.slane %v2010_v3, 1  ;;  %v2037_v15 = vrot.slane %v2036_v24, 2 }
 0x284   :  { %v2130_v35 = vmul.f32 %v3929_v55, %v3761_v44  ;;  %v4002_v54 = vpop.eup %3228  ;;  %v2005_v20 = vadd.f32 %v2004_v22, %v3955_v61  ;;  %v2049_v39 = vrot.slane %v2048_v5, 4  ;;  %3240 = vpow2.f32 %v1860_v25  ;;  %v4244_v25 = vld [vmem:[#allocation33_spill] sm:$0xff] }
 0x285   :  { %v2128_v18 = vmul.f32 %v3822_v13, %v3721_v57  ;;  %v2031_v37 = vadd.f32 %v2030_v28, %v2029_v6  ;;  %v2019_v0 = vadd.f32 %v2018_v23, %v2017_v7  ;;  %v2041_v32 = vsel %vm1545_vm1, %v4002_v54, 0.0 }
 0x286   :  { %v2158_v8 = vpack.c.bf16 %v2131_v59, %v2130_v35  ;;  %v2057_v48 = vadd.f32 %v2056_v21, %v2055_v53  ;;  %v2042_v31 = vrot.slane %v2041_v32, 4  ;;  %3242 = vrcp.f32 %v1998_v14 }
 0x287   :  { %v2157_v50 = vpack.c.bf16 %v2129_v38, %v2128_v18  ;;  %v2012_v44 = vadd.f32 %v2011_v33, %v2010_v3  ;;  %v2038_v55 = vadd.f32 %v2037_v15, %v2036_v24  ;;  %3244 = vrcp.f32 %v2005_v20  ;;  %v4242_v3 = vld [vmem:[#allocation27_spill] sm:$0xff] }
 0x288   :  { %v4009_v16 = vpop.eup %3230  ;;  %v2025_v61 = vrot.slane %v2024_v60, 1  ;;  %v2050_v17 = vadd.f32 %v2049_v39, %v2048_v5  ;;  %v2043_v40 = vadd.f32 %v2042_v31, %v2041_v32  ;;  %v2032_v13 = vrot.slane %v2031_v37, 1  ;;  %v4246_v18 = vld [vmem:[#allocation31_spill] sm:$0xff]  ;;  %v4248_v31 = vld [vmem:[#allocation38_spill] sm:$0xff] }
 0x289   :  { %3028 = vmatmul.mubr.msk.bf16.gmra.mxu0 %vm1545_vm1, %v2157_v50  ;;  %v4012_v57 = vpop.eup %3232  ;;  %3246 = vrcp.f32 %v2019_v0  ;;  %v2076_v1 = vsel %vm1545_vm1, %v4009_v16, 0.0  ;;  %v2135_v63 = vmul.f32 %v3227_v58, %v3862_v10  ;;  %v2058_v27 = vrot.slane %v2057_v48, 2  ;;  %v4243_v10 = vld [vmem:[#allocation35_spill] sm:$0xff] }
 0x28a   :  { %3031 = vmatprep.mubr.msk.bf16.mxu0 %vm1545_vm1, %v2158_v8  ;;  %v2044_v62 = vrot.slane %v2043_v40, 2  ;;  %v2062_v12 = vsel %vm1545_vm1, %v4012_v57, 0.0  ;;  %v2133_v11 = vmul.f32 %v3932_v36, %v3768_v43  ;;  %3248 = vrcp.f32 %v2012_v44 }
 0x28b   :  { %v2039_v6 = vrot.slane %v2038_v55, 1  ;;  %v2063_v56 = vrot.slane %v2062_v12, 4  ;;  %v2134_v52 = vmul.f32 %v3950_v42, %v3826_v51  ;;  %v2051_v41 = vrot.slane %v2050_v17, 2 }
 0x28c   :  { %v3235_v7 = vpop.eup %3234  ;;  %v2045_v45 = vadd.f32 %v2044_v62, %v2043_v40  ;;  %v2077_v4 = vrot.slane %v2076_v1, 4  ;;  %v2132_v34 = vmul.f32 %v4243_v10, %v4242_v3  ;;  %v2033_v46 = vadd.f32 %v2032_v13, %v2031_v37  ;;  %v4251_v3 = vld [vmem:[#allocation36_spill] sm:$0xff] }
 0x28d   :  { %v4026_v30 = vpop.eup %3236  ;;  %v2064_v24 = vadd.f32 %v2063_v56, %v2062_v12  ;;  %v2160_v53 = vpack.c.bf16 %v2135_v63, %v2134_v52  ;;  %v2059_v26 = vadd.f32 %v2058_v27, %v2057_v48  ;;  %v2040_v51 = vadd.f32 %v2039_v6, %v2038_v55  ;;  %v4247_v48 = vld [vmem:[#allocation28_spill] sm:$0xff]  ;;  %v4249_v56 = vld [vmem:[#allocation37_spill] sm:$0xff] }
 0x28e   :  { %v2046_v43 = vrot.slane %v2045_v45, 1  ;;  %v2083_v36 = vsel %vm1545_vm1, %v4026_v30, 0.0  ;;  %v2159_v2 = vpack.c.bf16 %v2133_v11, %v2132_v34  ;;  %v2026_v29 = vadd.f32 %v2025_v61, %v2024_v60  ;;  %v4245_v60 = vld [vmem:[#allocation29_spill] sm:$0xff] }
 0x28f   :  { %v3239_v14 = vpop.eup %3238  ;;  %v2065_v42 = vrot.slane %v2064_v24, 2  ;;  %v2084_v22 = vrot.slane %v2083_v36, 4  ;;  %v2052_v58 = vadd.f32 %v2051_v41, %v2050_v17  ;;  %v2078_v23 = vadd.f32 %v2077_v4, %v2076_v1  ;;  %v4250_v41 = vld [vmem:[#allocation32_spill] sm:$0xff] }
 0x290   :  { %v2047_v28 = vadd.f32 %v2046_v43, %v2045_v45  ;;  %3250 = vrcp.f32 %v2033_v46  ;;  %v2139_v38 = vmul.f32 %v3235_v7, %v4244_v25  ;;  %v2060_v33 = vrot.slane %v2059_v26, 1  ;;  %v4252_v46 = vld [vmem:[#allocation30_spill] sm:$0xff] }
 0x291   :  { %3032 = vmatmul.mubr.msk.bf16.gmra.mxu0 %vm1545_vm1, %v2159_v2  ;;  %v4031_v5 = vpop.eup %3240  ;;  %v2066_v59 = vadd.f32 %v2065_v42, %v2064_v24  ;;  %v2085_v21 = vadd.f32 %v2084_v22, %v2083_v36  ;;  %v2137_v35 = vmul.f32 %v3953_v9, %v4245_v60  ;;  %v2138_v37 = vmul.f32 %v3239_v14, %v4246_v18 }
 0x292   :  { %3035 = vmatprep.mubr.msk.bf16.mxu0 %vm1545_vm1, %v2160_v53  ;;  %3252 = vrcp.f32 %v2047_v28  ;;  %v2069_v15 = vsel %vm1545_vm1, %v4031_v5, 0.0  ;;  %v2053_v32 = vrot.slane %v2052_v58, 1  ;;  %v2079_v8 = vrot.slane %v2078_v23, 2 }
 0x293   :  { %3254 = vrcp.f32 %v2040_v51  ;;  %v2086_v20 = vrot.slane %v2085_v21, 2  ;;  %v2070_v39 = vrot.slane %v2069_v15, 4  ;;  %v3243_v0 = vpop.eup %3242  ;;  %v2136_v50 = vmul.f32 %v4248_v31, %v4247_v48 }
 0x294   :  { %3256 = vrcp.f32 %v2026_v29  ;;  %v3245_v44 = vpop.eup %3244  ;;  %v2067_v55 = vrot.slane %v2066_v59, 1  ;;  %v2162_v17 = vpack.c.bf16 %v2139_v38, %v2138_v37  ;;  %v2061_v13 = vadd.f32 %v2060_v33, %v2059_v26 }
 0x295   :  { %v2071_v61 = vadd.f32 %v2070_v39, %v2069_v15  ;;  %v2087_v1 = vadd.f32 %v2086_v20, %v2085_v21  ;;  %v2161_v9 = vpack.c.bf16 %v2137_v35, %v2136_v50  ;;  %v2054_v62 = vadd.f32 %v2053_v32, %v2052_v58  ;;  %v4253_v58 = vld [vmem:[#allocation39_spill] sm:$0xff] }
 0x296   :  { %v3247_v40 = vpop.eup %3246  ;;  %v2080_v12 = vadd.f32 %v2079_v8, %v2078_v23  ;;  %v2068_v11 = vadd.f32 %v2067_v55, %v2066_v59  ;;  %3258 = vrcp.f32 %v2061_v13  ;;  %v2141_v45 = vmul.f32 %v3245_v44, %v4250_v41  ;;  %v4254_v59 = vld [vmem:[#allocation34_spill] sm:$0xff] }
 0x297   :  { %v2072_v63 = vrot.slane %v2071_v61, 2  ;;  %v3249_v27 = vpop.eup %3248  ;;  %v2143_v52 = vmul.f32 %v3247_v40, %v4249_v56  ;;  %v2088_v7 = vrot.slane %v2087_v1, 1  ;;  %3260 = vrcp.f32 %v2054_v62 }
 0x298   :  { %v2142_v10 = vmul.f32 %v3249_v27, %v4251_v3  ;;  %v2081_v34 = vrot.slane %v2080_v12, 1  ;;  %v2140_v24 = vmul.f32 %v3243_v0, %v4252_v46  ;;  %3262 = vrcp.f32 %v2068_v11 }
 0x299   :  { %3036 = vmatmul.mubr.msk.bf16.gmra.mxu0 %vm1545_vm1, %v2161_v9  ;;  %v2073_v6 = vadd.f32 %v2072_v63, %v2071_v61  ;;  %v2089_v36 = vadd.f32 %v2088_v7, %v2087_v1  ;;  %v4072_v7 = vld [vmem:[%s4206_s8] ss:$0 sm:$0xff]  ;;  %s3429_s8 = smov [#allocation13]  }
 0x29a   :  { %3039 = vmatprep.mubr.msk.bf16.mxu0 %vm1545_vm1, %v2162_v17  ;;  %v2164_v26 = vpack.c.bf16 %v2143_v52, %v2142_v10  ;;  %v2163_v2 = vpack.c.bf16 %v2141_v45, %v2140_v24  ;;  %v2082_v42 = vadd.f32 %v2081_v34, %v2080_v12  ;;  %v4255_v34 = vld [vmem:[#allocation19_spill] sm:$0xff]  ;;  %v4256_v24 = vld [vmem:[#allocation20_spill] sm:$0xff]  ;;  %s2687_s24 = sshll.u32 %s3429_s8, 4  ;;  %s2688_s24 = int_to_ptr.vmem [resolvable:$true] %s2687_s24 }
 0x29b   :  { %v2074_v4 = vrot.slane %v2073_v6, 1  ;;  %v4080_v46 = vadd.f32 %v4255_v34, %v4072_v7  ;;  %s3390_s25 = scalar_lea.vmem %s2688_s24, 512  ;;  %p3395_p3 = scmp.lt.s32.totalorder %s2688_s24, %s2688_s24 }
 0x29c   :  { %p3391_p2 = scmp.ne.s32.totalorder %s2688_s24, %s3390_s25  ;;  %p3396_p4 = scmp.lt.s32.totalorder %s3390_s25, %s3390_s25 }
 0x29d   :  { %v2075_v53 = vadd.f32 %v2074_v4, %v2073_v6  ;;  %v3251_v43 = vpop.eup %3250 }
 0x29e   :  { %v2145_v28 = vmul.f32 %v3251_v43, %v4253_v58  ;;  %p3397_p5 = por %p3396_p4, %p3395_p3 }
 0x29f   :  { %v3253_v14 = vpop.eup %3252  ;;  %3264 = vrcp.f32 %v2075_v53  ;;  %v4084_v53 = vadd.f32 %v4072_v7, %v4256_v24 }
 0x2a0   :  { %v3255_v51 = vpop.eup %3254  ;;  %v2147_v29 = vmul.f32 %v3253_v14, %v4002_v54  ;;  %3266 = vrcp.f32 %v2089_v36  ;;  %p3398_p6 = pnand %p3397_p5, %p3391_p2 }
 0x2a1   :  { %3040 = vmatmul.mubr.msk.bf16.gmra.mxu0 %vm1545_vm1, %v2163_v2  ;;  %v3257_v22 = vpop.eup %3256  ;;  %v2146_v23 = vmul.f32 %v3255_v51, %v3961_v47  ;;  %3268 = vrcp.f32 %v2082_v42  ;;  %v4258_v2 = vld [vmem:[#allocation22_spill] sm:$0xff] }
 0x2a2   :  { %3043 = vmatprep.mubr.msk.bf16.mxu0 %vm1545_vm1, %v2164_v26  ;;  %v2144_v21 = vmul.f32 %v3257_v22, %v4254_v59  ;;  %v4257_v26 = vld [vmem:[#allocation21_spill] sm:$0xff]  ;;  %v4092_v14 = vadd.f32 %v4072_v7, %v4258_v2 }
 0x2a3   :  { %v2166_v25 = vpack.c.bf16 %v2147_v29, %v2146_v23  ;;  %v3259_v33 = vpop.eup %3258  ;;  %v4088_v43 = vadd.f32 %v4257_v26, %v4072_v7  ;;  %v4259_v29 = vld [vmem:[#allocation23_spill] sm:$0xff] }
 0x2a4   :  { %v2165_v38 = vpack.c.bf16 %v2145_v28, %v2144_v21  ;;  %v3261_v15 = vpop.eup %3260  ;;  %v2149_v35 = vmul.f32 %v3259_v33, %v3975_v49  ;;  %v4097_v58 = vadd.f32 %v4259_v29, %v4072_v7 }
 0x2a5   :  { %v3263_v60 = vpop.eup %3262  ;;  %v2148_v20 = vmul.f32 %v3261_v15, %v3972_v19  ;;  %v2957_v19 = vpop.f32.mrf.mxu0 }
 0x2a6   :  { %v2150_v39 = vmul.f32 %v3263_v60, %v4012_v57  ;;  %v857_v45 = vadd.f32 %v2957_v19, %v4072_v7 }
 0x2a7   :  { %v2167_v18 = vpack.c.bf16 %v2149_v35, %v2148_v20  ;;  %v848_v31 = vpop.f32.mrf.mxu0 }
 0x2a8   :  { %v849_v3 = vadd.f32 %v4072_v7, %v848_v31 }
 0x2a9   :  { %3044 = vmatmul.mubr.msk.bf16.gmra.mxu0 %vm1545_vm1, %v2165_v38  ;;  %v2958_v57 = vpop.f32.mrf.mxu0 }
 0x2aa   :  { %3047 = vmatprep.mubr.msk.bf16.mxu0 %vm1545_vm1, %v2166_v25  ;;  %v860_v51 = vadd.f32 %v2958_v57, %v4072_v7 }
 0x2ab   :  { %v851_v50 = vpop.f32.mrf.mxu0 }
 0x2ac   :  { %v3265_v54 = vpop.eup %3264  ;;  %v852_v28 = vadd.f32 %v4072_v7, %v851_v50 }
 0x2ad   :  { %v2151_v47 = vmul.f32 %v3265_v54, %v4031_v5  ;;  %v3267_v37 = vpop.eup %3266  ;;  %v2961_v5 = vpop.f32.mrf.mxu0 }
 0x2ae   :  { %v3269_v32 = vpop.eup %3268  ;;  %v2153_v8 = vmul.f32 %v3267_v37, %v4026_v30  ;;  %v873_v23 = vadd.f32 %v2961_v5, %v4072_v7 }
 0x2af   :  { %v2168_v0 = vpack.c.bf16 %v2151_v47, %v2150_v39  ;;  %v2152_v48 = vmul.f32 %v3269_v32, %v4009_v16  ;;  %v864_v44 = vpop.f32.mrf.mxu0 }
 0x2b0   :  { %v865_v59 = vadd.f32 %v4072_v7, %v864_v44 }
 0x2b1   :  { %3048 = vmatmul.mubr.msk.bf16.gmra.mxu0 %vm1545_vm1, %v2167_v18  ;;  %v2169_v49 = vpack.c.bf16 %v2153_v8, %v2152_v48  ;;  %v2962_v55 = vpop.f32.mrf.mxu0 }
 0x2b2   :  { %3051 = vmatprep.mubr.msk.bf16.mxu0 %vm1545_vm1, %v2168_v0  ;;  %v876_v25 = vadd.f32 %v2962_v55, %v4072_v7 }
 0x2b3   :  { %v867_v61 = vpop.f32.mrf.mxu0 }
 0x2b4   :  { %v868_v60 = vadd.f32 %v4072_v7, %v867_v61 }
 0x2b5   :  { %v2965_v17 = vpop.f32.mrf.mxu0 }
 0x2b6   :  { %v889_v35 = vadd.f32 %v2965_v17, %v4072_v7 }
 0x2b7   :  { %v880_v40 = vpop.f32.mrf.mxu0 }
 0x2b8   :  { %v881_v54 = vadd.f32 %v4072_v7, %v880_v40 }
 0x2b9   :  { %3052 = vmatmul.mubr.msk.bf16.gmra.mxu0 %vm1545_vm1, %v2169_v49  ;;  %v2966_v13 = vpop.f32.mrf.mxu0 }
 0x2ba   :  { %v4107_v20 = vadd.f32 %v2966_v13, %v4072_v7 }
 0x2bb   :  { %v883_v1 = vpop.f32.mrf.mxu0 }
 0x2bc   :  { %v4110_v32 = vadd.f32 %v4072_v7, %v883_v1 }
 0x2bd   :  { %v2969_v9 = vpop.f32.mrf.mxu0 }
 0x2be   :  { %v4113_v8 = vadd.f32 %v2969_v9, %v4072_v7 }
 0x2bf   :  { %v896_v63 = vpop.f32.mrf.mxu0 }
 0x2c0   :  { %v4116_v48 = vadd.f32 %v4072_v7, %v896_v63 }
 0x2c1   :  { %v2970_v30 = vpop.f32.mrf.mxu0 }
 0x2c2   :  { %v4119_v49 = vadd.f32 %v2970_v30, %v4072_v7 }
 0x2c3   :  { %v899_v27 = vpop.f32.mrf.mxu0 }
 0x2c4   :  { %v4122_v31 = vadd.f32 %v4072_v7, %v899_v27 }
 0x2c5   :  { %v2973_v16 = vpop.f32.mrf.mxu0 }
 0x2c6   :  { %v4125_v44 = vadd.f32 %v2973_v16, %v4072_v7 }
 0x2c7   :  { %v912_v62 = vpop.f32.mrf.mxu0 }
 0x2c8   :  { %v4128_v55 = vadd.f32 %v4072_v7, %v912_v62 }
 0x2c9   :  { %v2974_v12 = vpop.f32.mrf.mxu0 }
 0x2ca   :  { %v4131_v61 = vadd.f32 %v2974_v12, %v4072_v7 }
 0x2cb   :  { %v915_v11 = vpop.f32.mrf.mxu0 }
 0x2cc   :  { %v4134_v30 = vadd.f32 %v4072_v7, %v915_v11 }
 0x2cd   :  { %v2977_v6 = vpop.f32.mrf.mxu0 }
 0x2ce   :  { %v4137_v27 = vadd.f32 %v2977_v6, %v4072_v7 }
 0x2cf   :  { %v4065_v56 = vpop.f32.mrf.mxu0 }
 0x2d1   :  { %v4067_v52 = vpop.f32.mrf.mxu0 }
 0x2d3   :  { %v4074_v41 = vpop.f32.mrf.mxu0 }
 0x340   :  { %v3025_v4 = vpop.f32.mrf.mxu0 }
 0x341   :  { %v2385_v10 = vmul.f32 %v3025_v4, %v857_v45 }
 0x342   :  { %v2256_v36 = vpop.f32.mrf.mxu0 }
 0x343   :  { %v2427_v42 = vrot.slane %v2385_v10, 4  ;;  %v2383_v22 = vmul.f32 %v2256_v36, %v849_v3 }
 0x344   :  { %v3026_v21 = vpop.f32.mrf.mxu0 }
 0x345   :  { %v2428_v38 = vadd.f32 %v2427_v42, %v2385_v10  ;;  %v2415_v33 = vrot.slane %v2383_v22, 4  ;;  %v2386_v15 = vmul.f32 %v3026_v21, %v860_v51 }
 0x346   :  { %v2259_v39 = vpop.f32.mrf.mxu0 }
 0x347   :  { %v2429_v47 = vrot.slane %v2428_v38, 2  ;;  %v2416_v18 = vadd.f32 %v2415_v33, %v2383_v22  ;;  %v2433_v37 = vrot.slane %v2386_v15, 4  ;;  %v2384_v0 = vmul.f32 %v2259_v39, %v852_v28 }
 0x349   :  { %v3029_v19 = vpop.f32.mrf.mxu0  ;;  %v2417_v57 = vrot.slane %v2416_v18, 2  ;;  %v2434_v50 = vadd.f32 %v2433_v37, %v2386_v15  ;;  %v2421_v5 = vrot.slane %v2384_v0, 4  ;;  %v2430_v13 = vadd.f32 %v2429_v47, %v2428_v38 }
 0x34a   :  { %v2389_v17 = vmul.f32 %v3029_v19, %v873_v23 }
 0x34b   :  { %v2272_v40 = vpop.f32.mrf.mxu0  ;;  %v2418_v1 = vadd.f32 %v2417_v57, %v2416_v18  ;;  %v2435_v9 = vrot.slane %v2434_v50, 2  ;;  %v2422_v63 = vadd.f32 %v2421_v5, %v2384_v0  ;;  %v2431_v36 = vrot.slane %v2430_v13, 1 }
 0x34c   :  { %v2451_v16 = vrot.slane %v2389_v17, 4  ;;  %v2387_v45 = vmul.f32 %v2272_v40, %v865_v59 }
 0x34d   :  { %v3030_v4 = vpop.f32.mrf.mxu0  ;;  %v2436_v62 = vadd.f32 %v2435_v9, %v2434_v50  ;;  %v2423_v3 = vrot.slane %v2422_v63, 2  ;;  %v2419_v12 = vrot.slane %v2418_v1, 1 }
 0x34e   :  { %v2452_v10 = vadd.f32 %v2451_v16, %v2389_v17  ;;  %v2439_v34 = vrot.slane %v2387_v45, 4  ;;  %v2390_v24 = vmul.f32 %v3030_v4, %v876_v25 }
 0x34f   :  { %v2275_v26 = vpop.f32.mrf.mxu0  ;;  %v2424_v2 = vadd.f32 %v2423_v3, %v2422_v63  ;;  %v2437_v51 = vrot.slane %v2436_v62, 1  ;;  %v2420_v21 = vadd.f32 %v2419_v12, %v2418_v1 }
 0x350   :  { %v2388_v11 = vmul.f32 %v2275_v26, %v868_v60  ;;  %v2453_v42 = vrot.slane %v2452_v10, 2  ;;  %v2440_v6 = vadd.f32 %v2439_v34, %v2387_v45  ;;  %v2457_v22 = vrot.slane %v2390_v24, 4 }
 0x351   :  { %v3033_v29 = vpop.f32.mrf.mxu0  ;;  %v2425_v28 = vrot.slane %v2424_v2, 1  ;;  %v2432_v60 = vadd.f32 %v2431_v36, %v2430_v13  ;;  %v2438_v0 = vadd.f32 %v2437_v51, %v2436_v62 }
 0x352   :  { %v2445_v23 = vrot.slane %v2388_v11, 4  ;;  %v2393_v59 = vmul.f32 %v3033_v29, %v889_v35  ;;  %v2454_v38 = vadd.f32 %v2453_v42, %v2452_v10  ;;  %v2441_v33 = vrot.slane %v2440_v6, 2 }
 0x353   :  { %v2458_v15 = vadd.f32 %v2457_v22, %v2390_v24  ;;  %v2288_v25 = vpop.f32.mrf.mxu0  ;;  %v2426_v39 = vadd.f32 %v2425_v28, %v2424_v2 }
 0x354   :  { %v2446_v47 = vadd.f32 %v2445_v23, %v2388_v11  ;;  %v2475_v18 = vrot.slane %v2393_v59, 4  ;;  %v2391_v37 = vmul.f32 %v2288_v25, %v881_v54  ;;  %v2442_v19 = vadd.f32 %v2441_v33, %v2440_v6 }
 0x355   :  { %v2459_v57 = vrot.slane %v2458_v15, 2  ;;  %v3034_v50 = vpop.f32.mrf.mxu0  ;;  %v2640_v5 = vsel %vm2639_vm2, %v2426_v39, %v2420_v21  ;;  %v2455_v9 = vrot.slane %v2454_v38, 1 }
 0x356   :  { %v2447_v17 = vrot.slane %v2446_v47, 2  ;;  %v2476_v40 = vadd.f32 %v2475_v18, %v2393_v59  ;;  %v2463_v35 = vrot.slane %v2391_v37, 4  ;;  %v2642_v1 = vsel %vm2641_vm3, %v2432_v60, %v2640_v5 }
 0x357   :  { %v2443_v63 = vrot.slane %v2442_v19, 1  ;;  %v2460_v16 = vadd.f32 %v2459_v57, %v2458_v15  ;;  %v2291_v45 = vpop.f32.mrf.mxu0  ;;  %v2644_v4 = vsel %vm2643_vm4, %v2438_v0, %v2642_v1  ;;  %v2394_v10 = vmul.f32 %v3034_v50, %v4107_v20 }
 0x358   :  { %v2448_v3 = vadd.f32 %v2447_v17, %v2446_v47  ;;  %v2477_v54 = vrot.slane %v2476_v40, 2  ;;  %v2464_v13 = vadd.f32 %v2463_v35, %v2391_v37  ;;  %v2392_v34 = vmul.f32 %v2291_v45, %v4110_v32 }
 0x359   :  { %v2444_v62 = vadd.f32 %v2443_v63, %v2442_v19  ;;  %v2461_v12 = vrot.slane %v2460_v16, 1  ;;  %v3037_v24 = vpop.f32.mrf.mxu0  ;;  %v2481_v51 = vrot.slane %v2394_v10, 4  ;;  %v2456_v22 = vadd.f32 %v2455_v9, %v2454_v38 }
 0x35a   :  { %v2449_v26 = vrot.slane %v2448_v3, 1  ;;  %v2478_v36 = vadd.f32 %v2477_v54, %v2476_v40  ;;  %v2465_v2 = vrot.slane %v2464_v13, 2  ;;  %v2397_v11 = vmul.f32 %v3037_v24, %v4113_v8 }
 0x35b   :  { %v2469_v42 = vrot.slane %v2392_v34, 4  ;;  %v2304_v6 = vpop.f32.mrf.mxu0  ;;  %v2646_v59 = vsel %vm2645_vm5, %v2444_v62, %v2644_v4  ;;  %v2482_v20 = vadd.f32 %v2481_v51, %v2394_v10  ;;  %v2462_v15 = vadd.f32 %v2461_v12, %v2460_v16 }
 0x35c   :  { %v2450_v29 = vadd.f32 %v2449_v26, %v2448_v3  ;;  %v2466_v28 = vadd.f32 %v2465_v2, %v2464_v13  ;;  %v2499_v23 = vrot.slane %v2397_v11, 4  ;;  %v2395_v32 = vmul.f32 %v2304_v6, %v4116_v48 }
 0x35d   :  { %v2470_v21 = vadd.f32 %v2469_v42, %v2392_v34  ;;  %v3038_v33 = vpop.f32.mrf.mxu0  ;;  %v2479_v8 = vrot.slane %v2478_v36, 1  ;;  %v2483_v18 = vrot.slane %v2482_v20, 2  ;;  %v929_v1 = vadd.f32 %v4072_v7, %v4065_v56 }
 0x35e   :  { %v2648_v25 = vsel %vm2647_vm6, %v2450_v29, %v2646_v59  ;;  %v2500_v39 = vadd.f32 %v2499_v23, %v2397_v11  ;;  %v2487_v38 = vrot.slane %v2395_v32, 4  ;;  %v2467_v19 = vrot.slane %v2466_v28, 1 }
 0x35f   :  { %v2650_v47 = vsel %vm2649_vm7, %v2456_v22, %v2648_v25  ;;  %v2471_v37 = vrot.slane %v2470_v21, 2  ;;  %v2307_v60 = vpop.f32.mrf.mxu0  ;;  %v2398_v50 = vmul.f32 %v3038_v33, %v4119_v49  ;;  %v2484_v48 = vadd.f32 %v2483_v18, %v2482_v20 }
 0x360   :  { %v2652_v0 = vsel %vm2651_vm8, %v2462_v15, %v2650_v47  ;;  %v2501_v57 = vrot.slane %v2500_v39, 2  ;;  %v2488_v17 = vadd.f32 %v2487_v38, %v2395_v32  ;;  %v2396_v40 = vmul.f32 %v2307_v60, %v4122_v31 }
 0x361   :  { %2678 = vst [vmem:[#allocation13] sm:$0xff] %v2652_v0  ;;  %v2472_v5 = vadd.f32 %v2471_v37, %v2470_v21  ;;  %v3041_v35 = vpop.f32.mrf.mxu0  ;;  %v2505_v63 = vrot.slane %v2398_v50, 4  ;;  %v2480_v45 = vadd.f32 %v2479_v8, %v2478_v36  ;;  %v2485_v49 = vrot.slane %v2484_v48, 1 }
 0x362   :  { %v2502_v9 = vadd.f32 %v2501_v57, %v2500_v39  ;;  %v2401_v16 = vmul.f32 %v3041_v35, %v4125_v44  ;;  %v2489_v3 = vrot.slane %v2488_v17, 2  ;;  %v2493_v54 = vrot.slane %v2396_v40, 4 }
 0x363   :  { %v2473_v4 = vrot.slane %v2472_v5, 1  ;;  %v2320_v13 = vpop.f32.mrf.mxu0  ;;  %v2506_v62 = vadd.f32 %v2505_v63, %v2398_v50  ;;  %v2468_v34 = vadd.f32 %v2467_v19, %v2466_v28  ;;  %v2486_v23 = vadd.f32 %v2485_v49, %v2484_v48 }
 0x364   :  { %v2523_v12 = vrot.slane %v2401_v16, 4  ;;  %v2399_v10 = vmul.f32 %v2320_v13, %v4128_v55  ;;  %v2490_v24 = vadd.f32 %v2489_v3, %v2488_v17  ;;  %v2494_v26 = vadd.f32 %v2493_v54, %v2396_v40 }
 0x365   :  { %v2474_v31 = vadd.f32 %v2473_v4, %v2472_v5  ;;  %v3042_v2 = vpop.f32.mrf.mxu0  ;;  %v2503_v56 = vrot.slane %v2502_v9, 1  ;;  %v2507_v11 = vrot.slane %v2506_v62, 2  ;;  %v940_v20 = vadd.f32 %v4067_v52, %v4072_v7 }
 0x366   :  { %v2524_v51 = vadd.f32 %v2523_v12, %v2401_v16  ;;  %v2511_v42 = vrot.slane %v2399_v10, 4  ;;  %v2491_v36 = vrot.slane %v2490_v24, 1  ;;  %v2495_v6 = vrot.slane %v2494_v26, 2 }
 0x367   :  { %v2653_v44 = vsel %vm2639_vm2, %v2474_v31, %v2468_v34  ;;  %v2402_v22 = vmul.f32 %v3042_v2, %v4131_v61  ;;  %v2323_v29 = vpop.f32.mrf.mxu0  ;;  %v2508_v55 = vadd.f32 %v2507_v11, %v2506_v62  ;;  %v932_v0 = vadd.f32 %v4072_v7, %v4074_v41 }
 0x368   :  { %v2654_v59 = vsel %vm2641_vm3, %v2480_v45, %v2653_v44  ;;  %v2512_v28 = vadd.f32 %v2511_v42, %v2399_v10  ;;  %v2496_v21 = vadd.f32 %v2495_v6, %v2494_v26  ;;  %v2525_v32 = vrot.slane %v2524_v51, 2 }
 0x369   :  { %v2529_v33 = vrot.slane %v2402_v22, 4  ;;  %v3045_v15 = vpop.f32.mrf.mxu0  ;;  %v2492_v25 = vadd.f32 %v2491_v36, %v2490_v24  ;;  %v2655_v8 = vsel %vm2643_vm4, %v2486_v23, %v2654_v59  ;;  %v2400_v47 = vmul.f32 %v2323_v29, %v4134_v30 }
 0x36a   :  { %v2513_v39 = vrot.slane %v2512_v28, 2  ;;  %v2509_v61 = vrot.slane %v2508_v55, 1  ;;  %v2497_v18 = vrot.slane %v2496_v21, 1  ;;  %v2405_v38 = vmul.f32 %v3045_v15, %v4137_v27 }
 0x36b   :  { %v2530_v37 = vadd.f32 %v2529_v33, %v2402_v22  ;;  %v2336_v60 = vpop.f32.mrf.mxu0  ;;  %v2504_v52 = vadd.f32 %v2503_v56, %v2502_v9  ;;  %v2517_v57 = vrot.slane %v2400_v47, 4  ;;  %v2656_v35 = vsel %vm2645_vm5, %v2492_v25, %v2655_v8  ;;  %v4260_v56 = vld [vmem:[#allocation24_spill] sm:$0xff] }
 0x36c   :  { %v2514_v19 = vadd.f32 %v2513_v39, %v2512_v28  ;;  %v2498_v50 = vadd.f32 %v2497_v18, %v2496_v21  ;;  %v2547_v5 = vrot.slane %v2405_v38, 4  ;;  %v2403_v17 = vmul.f32 %v2336_v60, %v929_v1  ;;  %v4261_v18 = vld [vmem:[#allocation25_spill] sm:$0xff] }
 0x36d   :  { %v2531_v48 = vrot.slane %v2530_v37, 2  ;;  %v3046_v40 = vpop.f32.mrf.mxu0  ;;  %v2526_v30 = vadd.f32 %v2525_v32, %v2524_v51  ;;  %v2518_v63 = vadd.f32 %v2517_v57, %v2400_v47  ;;  %v2510_v45 = vadd.f32 %v2509_v61, %v2508_v55 }
 0x36e   :  { %v2406_v16 = vmul.f32 %v3046_v40, %v940_v20  ;;  %v2657_v27 = vsel %vm2647_vm6, %v2498_v50, %v2656_v35  ;;  %v2548_v4 = vadd.f32 %v2547_v5, %v2405_v38  ;;  %v2535_v3 = vrot.slane %v2403_v17, 4 }
 0x36f   :  { %v2339_v54 = vpop.f32.mrf.mxu0  ;;  %v2658_v41 = vsel %vm2649_vm7, %v2504_v52, %v2657_v27  ;;  %v2515_v9 = vrot.slane %v2514_v19, 1  ;;  %v2519_v13 = vrot.slane %v2518_v63, 2  ;;  %v2532_v1 = vadd.f32 %v2531_v48, %v2530_v37  ;;  %v4262_v48 = vld [vmem:[#allocation26_spill] sm:$0xff] }
 0x370   :  { %v2553_v49 = vrot.slane %v2406_v16, 4  ;;  %v2659_v62 = vsel %vm2651_vm8, %v2510_v45, %v2658_v41  ;;  %v2549_v12 = vrot.slane %v2548_v4, 2  ;;  %v2536_v10 = vadd.f32 %v2535_v3, %v2403_v17 }
 0x371   :  { %v3049_v34 = vpop.f32.mrf.mxu0  ;;  %2679 = vst [vmem:[#allocation13 + $0x8] sm:$0xff] %v2659_v62  ;;  %v2520_v31 = vadd.f32 %v2519_v13, %v2518_v63  ;;  %v2404_v26 = vmul.f32 %v2339_v54, %v932_v0  ;;  %v961_v11 = vadd.f32 %v4072_v7, %v4260_v56  ;;  %v2527_v51 = vrot.slane %v2526_v30, 1 }
 0x372   :  { %v2554_v24 = vadd.f32 %v2553_v49, %v2406_v16  ;;  %v2409_v2 = vmul.f32 %v3049_v34, %v4080_v46  ;;  %v2550_v42 = vadd.f32 %v2549_v12, %v2548_v4  ;;  %v2537_v44 = vrot.slane %v2536_v10, 2 }
 0x373   :  { %v2352_v36 = vpop.f32.mrf.mxu0  ;;  %v2521_v6 = vrot.slane %v2520_v31, 1  ;;  %v2541_v29 = vrot.slane %v2404_v26, 4  ;;  %v2516_v59 = vadd.f32 %v2515_v9, %v2514_v19  ;;  %v2533_v55 = vrot.slane %v2532_v1, 1 }
 0x374   :  { %v2555_v22 = vrot.slane %v2554_v24, 2  ;;  %v2571_v23 = vrot.slane %v2409_v2, 4  ;;  %v2538_v28 = vadd.f32 %v2537_v44, %v2536_v10  ;;  %v2407_v20 = vmul.f32 %v2352_v36, %v4084_v53 }
 0x375   :  { %v3050_v21 = vpop.f32.mrf.mxu0  ;;  %v2522_v32 = vadd.f32 %v2521_v6, %v2520_v31  ;;  %v2542_v46 = vadd.f32 %v2541_v29, %v2404_v26  ;;  %v2528_v25 = vadd.f32 %v2527_v51, %v2526_v30  ;;  %v972_v37 = vadd.f32 %v4261_v18, %v4072_v7 }
 0x376   :  { %v2556_v33 = vadd.f32 %v2555_v22, %v2554_v24  ;;  %v2572_v15 = vadd.f32 %v2571_v23, %v2409_v2  ;;  %v2539_v8 = vrot.slane %v2538_v28, 1  ;;  %v2559_v39 = vrot.slane %v2407_v20, 4 }
 0x377   :  { %v2410_v47 = vmul.f32 %v3050_v21, %v4088_v43  ;;  %v2355_v61 = vpop.f32.mrf.mxu0  ;;  %v2660_v38 = vsel %vm2639_vm2, %v2522_v32, %v2516_v59  ;;  %v2551_v60 = vrot.slane %v2550_v42, 1  ;;  %v2543_v0 = vrot.slane %v2542_v46, 2 }
 0x378   :  { %v2661_v53 = vsel %vm2641_vm3, %v2528_v25, %v2660_v38  ;;  %v2557_v52 = vrot.slane %v2556_v33, 1  ;;  %v2560_v19 = vadd.f32 %v2559_v39, %v2407_v20  ;;  %v964_v5 = vadd.f32 %v4072_v7, %v4262_v48 }
 0x379   :  { %v2577_v57 = vrot.slane %v2410_v47, 4  ;;  %v3053_v50 = vpop.f32.mrf.mxu0  ;;  %v2534_v17 = vadd.f32 %v2533_v55, %v2532_v1  ;;  %v2544_v40 = vadd.f32 %v2543_v0, %v2542_v46  ;;  %v2573_v43 = vrot.slane %v2572_v15, 2 }
 0x37a   :  { %v2540_v35 = vadd.f32 %v2539_v8, %v2538_v28  ;;  %v2561_v30 = vrot.slane %v2560_v19, 2  ;;  %v2408_v16 = vmul.f32 %v2355_v61, %v4092_v14  ;;  %v2413_v3 = vmul.f32 %v3053_v50, %v4097_v58 }
 0x37b   :  { %v2578_v63 = vadd.f32 %v2577_v57, %v2410_v47  ;;  %v2368_v45 = vpop.f32.mrf.mxu0  ;;  %v2662_v27 = vsel %vm2643_vm4, %v2534_v17, %v2661_v53  ;;  %v2545_v4 = vrot.slane %v2544_v40, 1  ;;  %v2552_v41 = vadd.f32 %v2551_v60, %v2550_v42 }
 0x37c   :  { %v2411_v54 = vmul.f32 %v2368_v45, %v961_v11  ;;  %v2558_v9 = vadd.f32 %v2557_v52, %v2556_v33  ;;  %v2565_v49 = vrot.slane %v2408_v16, 4  ;;  %v2574_v1 = vadd.f32 %v2573_v43, %v2572_v15 }
 0x37d   :  { %v2579_v13 = vrot.slane %v2578_v63, 2  ;;  %v3054_v7 = vpop.f32.mrf.mxu0  ;;  %v2546_v62 = vadd.f32 %v2545_v4, %v2544_v40  ;;  %v2595_v12 = vrot.slane %v2413_v3, 4  ;;  %v2663_v34 = vsel %vm2645_vm5, %v2540_v35, %v2662_v27 }
 0x37e   :  { %v2583_v10 = vrot.slane %v2411_v54, 4  ;;  %v2562_v31 = vadd.f32 %v2561_v30, %v2560_v19  ;;  %v2566_v14 = vadd.f32 %v2565_v49, %v2408_v16  ;;  %v2414_v24 = vmul.f32 %v3054_v7, %v972_v37 }
 0x37f   :  { %v2371_v26 = vpop.f32.mrf.mxu0  ;;  %v2664_v2 = vsel %vm2647_vm6, %v2546_v62, %v2663_v34  ;;  %v2596_v56 = vadd.f32 %v2595_v12, %v2413_v3  ;;  %v2580_v42 = vadd.f32 %v2579_v13, %v2578_v63  ;;  %v2575_v28 = vrot.slane %v2574_v1, 1 }
 0x380   :  { %v2584_v58 = vadd.f32 %v2583_v10, %v2411_v54  ;;  %v2412_v11 = vmul.f32 %v2371_v26, %v964_v5  ;;  %v2665_v51 = vsel %vm2649_vm7, %v2552_v41, %v2664_v2  ;;  %v2567_v44 = vrot.slane %v2566_v14, 2 }
 0x381   :  { %v2666_v36 = vsel %vm2651_vm8, %v2558_v9, %v2665_v51  ;;  %v2597_v6 = vrot.slane %v2596_v56, 2  ;;  %v2601_v29 = vrot.slane %v2414_v24, 4  ;;  %v2563_v23 = vrot.slane %v2562_v31, 1 }
 0x382   :  { %v2585_v22 = vrot.slane %v2584_v58, 2  ;;  %2680 = vst [vmem:[#allocation13 + $0x10] sm:$0xff] %v2666_v36  ;;  %v2568_v59 = vadd.f32 %v2567_v44, %v2566_v14  ;;  %v2589_v55 = vrot.slane %v2412_v11, 4  ;;  %v2581_v32 = vrot.slane %v2580_v42, 1 }
 0x383   :  { %v2602_v21 = vadd.f32 %v2601_v29, %v2414_v24  ;;  %v2598_v15 = vadd.f32 %v2597_v6, %v2596_v56  ;;  %v2564_v39 = vadd.f32 %v2563_v23, %v2562_v31  ;;  %v2576_v18 = vadd.f32 %v2575_v28, %v2574_v1 }
 0x384   :  { %v2586_v20 = vadd.f32 %v2585_v22, %v2584_v58  ;;  %v2569_v33 = vrot.slane %v2568_v59, 1  ;;  %v2590_v46 = vadd.f32 %v2589_v55, %v2412_v11  ;;  %v2582_v60 = vadd.f32 %v2581_v32, %v2580_v42 }
 0x385   :  { %v2603_v8 = vrot.slane %v2602_v21, 2  ;;  %v2599_v19 = vrot.slane %v2598_v15, 1 }
 0x386   :  { %v2587_v25 = vrot.slane %v2586_v20, 1  ;;  %v2570_v47 = vadd.f32 %v2569_v33, %v2568_v59  ;;  %v2591_v61 = vrot.slane %v2590_v46, 2 }
 0x387   :  { %v2604_v38 = vadd.f32 %v2603_v8, %v2602_v21  ;;  %v2600_v40 = vadd.f32 %v2599_v19, %v2598_v15 }
 0x388   :  { %v2588_v37 = vadd.f32 %v2587_v25, %v2586_v20  ;;  %v2667_v0 = vsel %vm2639_vm2, %v2570_v47, %v2564_v39  ;;  %v2592_v53 = vadd.f32 %v2591_v61, %v2590_v46 }
 0x389   :  { %v2668_v52 = vsel %vm2641_vm3, %v2576_v18, %v2667_v0  ;;  %v2605_v50 = vrot.slane %v2604_v38, 1 }
 0x38a   :  { %v2669_v57 = vsel %vm2643_vm4, %v2582_v60, %v2668_v52  ;;  %v2593_v48 = vrot.slane %v2592_v53, 1 }
 0x38b   :  { %v2670_v5 = vsel %vm2645_vm5, %v2588_v37, %v2669_v57  ;;  %v2606_v43 = vadd.f32 %v2605_v50, %v2604_v38 }
 0x38c   :  { %v2594_v17 = vadd.f32 %v2593_v48, %v2592_v53 }
 0x38e   :  { %v2671_v35 = vsel %vm2647_vm6, %v2594_v17, %v2670_v5 }
 0x38f   :  { %v2672_v30 = vsel %vm2649_vm7, %v2600_v40, %v2671_v35 }
 0x390   :  { %v2673_v63 = vsel %vm2651_vm8, %v2606_v43, %v2672_v30 }
 0x391   :  { %2681 = vst [vmem:[#allocation13 + $0x18] sm:$0xff] %v2673_v63 }
 0x392   :  { %3401 = shalt.err (!%p3398_p6)
}
 0x393   :  { %s3430_s26 = smov 128   ;;  %s3431_s27 = smov 8  }
 0x394   :  { %2693 = dma.vmem_to_hbm [thread:$0]  %s2688_s24, 512, %s4208_s10, [#allocation4], %s3430_s26, %s3430_s26, %s3431_s27  }
 0x395   :  { %3418 = dma.done.wait [#allocation4], 512  }
 0x396   :  { %3419 = vsyncadd [#allocation4], 4294966784 }
 0x397   :  { %2697 = vsyncpa [#allocation3], 1 }
 0x398   :  { %2698 = vsyncpa [#allocation6], 1 }
 0x399   :  { %2699 = vsyncpa [#allocation9], 1 }
 0x39a   :  { %2700 = vsyncpa [#allocation12], 1 }
 0x39b   :  { %2701 = vsyncpa [#allocation4], 1 }

</bundles_post_ra>
